<compile_context>
chip_gen: v6e
topology: v6e:2x2x1
jax: 0.10.0
libtpu: 0.0.40
codegen_flags: <defaults>
</compile_context>

<pallas_src>
import functools

import jax
import jax.numpy as jnp
import numpy as np
from jax import lax
from jax.experimental import pallas as pl
from jax.experimental.pallas import tpu as pltpu

LANE = 128                              # TPU lane width
FC1_K = 512                             # 5*5*16 = 400 real fc1 inputs, padded
VMEM_LIMIT_BYTES = 32 * 1024 * 1024     # safe on v5e / v6e / v7x


def _round_up(x, m):
    return (x + m - 1) // m * m


def _pick_tile(nrows, cap, target_steps=4):
    """Row-tile size: aim for >= target_steps grid steps (2-core sharding on
    v7x + pipeline overlap) without exceeding `cap` rows (VMEM footprint)."""
    t = _round_up(max(1, -(-nrows // target_steps)), 8)
    return max(8, min(cap, t))


# ----------------------------------------------------------------------------
# Kernel 1: fused conv(matmul) + 2x2 max-pool + bias + ReLU   (per row tile)
# ----------------------------------------------------------------------------
def conv_relu_pool_kernel(p_ref, w_ref, b_ref, o_ref):
    # p_ref: (4, TM, Kpad) -- axis 0 enumerates the 2x2 pool-window positions
    # w_ref: (Kpad, 128), b_ref: (1, OC), o_ref: (TM, OC), OC in {8, 16}
    w = w_ref[...]
    # Unrolled max-accumulate over the 4 window positions: only a (TM, 128)
    # accumulator stays live (no (4*TM, 128) tall-matmul result to spill).
    acc = jnp.dot(p_ref[0], w, preferred_element_type=jnp.float32)
    for k in range(1, p_ref.shape[0]):
        acc = jnp.maximum(
            acc, jnp.dot(p_ref[k], w, preferred_element_type=jnp.float32))
    oc = o_ref.shape[-1]
    # bias + ReLU hoisted after the window max (exact: bias is window
    # invariant, ReLU monotone), applied on the compact OC lanes only.
    o_ref[...] = jnp.maximum(acc[:, :oc] + b_ref[...], 0.0)


# ----------------------------------------------------------------------------
# Kernel 2: fused MLP head  fc1 -> ReLU -> fc2 -> ReLU -> fc3  (per batch tile)
# ----------------------------------------------------------------------------
def mlp_kernel(x_ref, w1_ref, b1_ref, w2_ref, b2_ref, w3_ref, b3_ref, o_ref):
    h = jnp.dot(x_ref[...], w1_ref[...], preferred_element_type=jnp.float32)
    h = jnp.maximum(h + b1_ref[...], 0.0)
    h = jnp.dot(h, w2_ref[...], preferred_element_type=jnp.float32)
    h = jnp.maximum(h + b2_ref[...], 0.0)
    o_ref[...] = (jnp.dot(h, w3_ref[...], preferred_element_type=jnp.float32)
                  + b3_ref[...])


# ----------------------------------------------------------------------------
# Conv stage wrapper: host-side im2col (XLA glue) + gridded Pallas kernel
# ----------------------------------------------------------------------------
def conv_relu_pool(x_nhwc, w_mat, b_mat, kh, kw, oc_out):
    """x_nhwc: (B,H,W,C) f32.  w_mat: (Kpad,128) im2col weights (order ki,kj,c).
    Returns (B, PH, PW, oc_out); lanes >= true OC are exactly zero."""
    B, H, W, C = x_nhwc.shape
    K = kh * kw * C
    Kpad = w_mat.shape[0]
    assert Kpad % LANE == 0 and Kpad >= K
    OH, OW = H - kh + 1, W - kw + 1        # VALID conv output
    PH, PW = OH // 2, OW // 2              # after 2x2 max-pool, stride 2

    # Host-side im2col grouped by 2x2 pool-window position, feature order
    # (ki, kj, ic) matching the weight layout.
    # TODO(synk): move im2col in-kernel (DMA raw NHWC row bands + shifted VMEM
    #             views) once a formulation exists that doesn't degrade into
    #             3/6-lane scatters or tiny-K matmuls (see header note).
    cols = [x_nhwc[:, i:i + OH, j:j + OW, :]
            for i in range(kh) for j in range(kw)]
    patches = jnp.concatenate(cols, axis=-1)                  # (B, OH, OW, K)
    p = patches[:, :2 * PH, :2 * PW, :].reshape(B, PH, 2, PW, 2, K)
    p = p.transpose(2, 4, 0, 1, 3, 5).reshape(4, B * PH * PW, K)

    M = B * PH * PW
    tm_cap = 2048 if Kpad <= 128 else 1024   # keeps 2x-buffered block <= ~8MiB
    tm = _pick_tile(M, tm_cap)
    Mpad = _round_up(M, tm)                  # full blocks only
    p = jnp.pad(p, ((0, 0), (0, Mpad - M), (0, Kpad - K)))    # zero pad

    grid = (Mpad // tm,)
    cost = pl.CostEstimate(
        flops=2 * 4 * Mpad * Kpad * LANE,
        transcendentals=0,
        bytes_accessed=4 * (4 * Mpad * Kpad + Kpad * LANE + oc_out
                            + Mpad * oc_out))

    out = pl.pallas_call(
        conv_relu_pool_kernel,
        out_shape=jax.ShapeDtypeStruct((Mpad, oc_out), jnp.float32),
        grid_spec=pltpu.PrefetchScalarGridSpec(
            num_scalar_prefetch=0,
            grid=grid,
            in_specs=[
                # NOTE: pipeline_mode=pl.Buffered(3) could deepen buffering
                # for v7x's 3.2 TB/s HBM; unnecessary at these block sizes.
                pl.BlockSpec((4, tm, Kpad), lambda i: (0, i, 0)),
                pl.BlockSpec((Kpad, LANE), lambda i: (0, 0)),
                pl.BlockSpec((1, oc_out), lambda i: (0, 0)),
            ],
            out_specs=pl.BlockSpec((tm, oc_out), lambda i: (i, 0)),
        ),
        compiler_params=pltpu.CompilerParams(
            dimension_semantics=("parallel",),
            vmem_limit_bytes=VMEM_LIMIT_BYTES),
        cost_estimate=cost,
    )(p, w_mat, b_mat)
    return out[:M].reshape(B, PH, PW, oc_out)


# ----------------------------------------------------------------------------
# MLP head wrapper: gridded over batch tiles
# ----------------------------------------------------------------------------
def mlp_head(x, w1, b1, w2, b2, w3, b3, *, tb_cap=512):
    B, Kin = x.shape
    assert Kin % LANE == 0
    tb = _pick_tile(B, tb_cap)
    Bpad = _round_up(B, tb)
    xp = jnp.pad(x, ((0, Bpad - B), (0, 0)))
    grid = (Bpad // tb,)
    cost = pl.CostEstimate(
        flops=2 * Bpad * (Kin * LANE + 2 * LANE * LANE),
        transcendentals=0,
        bytes_accessed=4 * (Bpad * Kin + Kin * LANE + 2 * LANE * LANE
                            + 3 * LANE + Bpad * LANE))
    out = pl.pallas_call(
        mlp_kernel,
        out_shape=jax.ShapeDtypeStruct((Bpad, LANE), jnp.float32),
        grid_spec=pltpu.PrefetchScalarGridSpec(
            num_scalar_prefetch=0,
            grid=grid,
            in_specs=[
                pl.BlockSpec((tb, Kin), lambda i: (i, 0)),
                pl.BlockSpec((Kin, LANE), lambda i: (0, 0)),
                pl.BlockSpec((1, LANE), lambda i: (0, 0)),
                pl.BlockSpec((LANE, LANE), lambda i: (0, 0)),
                pl.BlockSpec((1, LANE), lambda i: (0, 0)),
                pl.BlockSpec((LANE, LANE), lambda i: (0, 0)),
                pl.BlockSpec((1, LANE), lambda i: (0, 0)),
            ],
            out_specs=pl.BlockSpec((tb, LANE), lambda i: (i, 0)),
        ),
        compiler_params=pltpu.CompilerParams(
            dimension_semantics=("parallel",),
            vmem_limit_bytes=VMEM_LIMIT_BYTES),
        cost_estimate=cost,
    )(xp, w1, b1, w2, b2, w3, b3)
    return out[:B]


# ----------------------------------------------------------------------------
# One-time host-side parameter prep: im2col weight layout, lane/K padding,
# fc1 rows permuted to the compact (h, w, c=16) flatten order, padded to 512.
# ----------------------------------------------------------------------------
def prepare_params(params):
    f32 = jnp.float32

    def conv_mats(w_oihw, b, kpad, ocpad):
        OC, IC, KH, KW = w_oihw.shape
        K = KH * KW * IC
        w = jnp.transpose(w_oihw, (2, 3, 1, 0)).reshape(K, OC).astype(f32)
        w = jnp.pad(w, ((0, kpad - K), (0, LANE - OC)))
        bm = jnp.pad(b.reshape(1, OC).astype(f32), ((0, 0), (0, ocpad - OC)))
        return w, bm

    c1_w, c1_b = conv_mats(params["conv1_w"], params["conv1_b"], 128, 8)
    c2_w, c2_b = conv_mats(params["conv2_w"], params["conv2_b"], 256, 16)

    # fc1: torch flatten order is (c, h, w); kernel feeds (h, w, c), K=400->512.
    w1 = params["fc1_w"].reshape(120, 16, 5, 5)            # (out, c, h, w)
    w1 = jnp.transpose(w1, (2, 3, 1, 0)).reshape(400, 120).astype(f32)
    w1p = jnp.pad(w1, ((0, FC1_K - 400), (0, LANE - 120)))
    b1p = jnp.pad(params["fc1_b"].reshape(1, 120).astype(f32),
                  ((0, 0), (0, LANE - 120)))

    w2p = jnp.pad(params["fc2_w"].T.astype(f32),
                  ((0, LANE - 120), (0, LANE - 84)))
    b2p = jnp.pad(params["fc2_b"].reshape(1, 84).astype(f32),
                  ((0, 0), (0, LANE - 84)))
    w3p = jnp.pad(params["fc3_w"].T.astype(f32),
                  ((0, LANE - 84), (0, LANE - 10)))
    b3p = jnp.pad(params["fc3_b"].reshape(1, 10).astype(f32),
                  ((0, 0), (0, LANE - 10)))

    return {"c1_w": c1_w, "c1_b": c1_b, "c2_w": c2_w, "c2_b": c2_b,
            "fc1_w": w1p, "fc1_b": b1p, "fc2_w": w2p, "fc2_b": b2p,
            "fc3_w": w3p, "fc3_b": b3p}


# ----------------------------------------------------------------------------
# Full forward pass (mirrors CNN.forward)
# ----------------------------------------------------------------------------
def cnn_forward(prep, x_nchw):
    x = jnp.transpose(x_nchw, (0, 2, 3, 1)).astype(jnp.float32)   # NCHW -> NHWC
    a1 = conv_relu_pool(x, prep["c1_w"], prep["c1_b"], 5, 5, 8)   # (B,14,14,8)
    a2 = conv_relu_pool(a1[..., :6], prep["c2_w"], prep["c2_b"],
                        5, 5, 16)                                  # (B,5,5,16)
    B = x_nchw.shape[0]
    xf = a2.reshape(B, 5 * 5 * 16)                 # (h, w, c) flatten, 400 real
    xf = jnp.pad(xf, ((0, 0), (0, FC1_K - 400)))   # lane-align K to 512
    logits = mlp_head(xf, prep["fc1_w"], prep["fc1_b"],
                      prep["fc2_w"], prep["fc2_b"],
                      prep["fc3_w"], prep["fc3_b"])
    return logits[:, :10]


# ----------------------------------------------------------------------------
# Deterministic parameter init (PyTorch default: U(-1/sqrt(fan_in), +))
# ----------------------------------------------------------------------------
def init_params(key):
    def u(k, shape, fan_in):
        lim = 1.0 / float(np.sqrt(fan_in))
        return jax.random.uniform(k, shape, jnp.float32, -lim, lim)

    ks = jax.random.split(key, 10)
    return {
        "conv1_w": u(ks[0], (6, 3, 5, 5), 3 * 5 * 5),
        "conv1_b": u(ks[1], (6,), 3 * 5 * 5),
        "conv2_w": u(ks[2], (16, 6, 5, 5), 6 * 5 * 5),
        "conv2_b": u(ks[3], (16,), 6 * 5 * 5),
        "fc1_w": u(ks[4], (120, 400), 400),
        "fc1_b": u(ks[5], (120,), 400),
        "fc2_w": u(ks[6], (84, 120), 120),
        "fc2_b": u(ks[7], (84,), 120),
        "fc3_w": u(ks[8], (10, 84), 84),
        "fc3_b": u(ks[9], (10,), 84),
    }


# ----------------------------------------------------------------------------
# Pure-JAX reference (for correctness check)
# ----------------------------------------------------------------------------
def cnn_reference(params, x):
    hp = lax.Precision.HIGHEST

    def conv(x, w, b):
        y = lax.conv_general_dilated(
            x, w, (1, 1), "VALID",
            dimension_numbers=("NCHW", "OIHW", "NCHW"), precision=hp)
        return y + b[None, :, None, None]

    def pool(x):
        return lax.reduce_window(x, -jnp.inf, lax.max,
                                 (1, 1, 2, 2), (1, 1, 2, 2), "VALID")

    x = pool(jax.nn.relu(conv(x, params["conv1_w"], params["conv1_b"])))
    x = pool(jax.nn.relu(conv(x, params["conv2_w"], params["conv2_b"])))
    x = x.reshape(-1, 16 * 5 * 5)
    x = jax.nn.relu(jnp.matmul(x, params["fc1_w"].T, precision=hp) + params["fc1_b"])
    x = jax.nn.relu(jnp.matmul(x, params["fc2_w"].T, precision=hp) + params["fc2_b"])
    return jnp.matmul(x, params["fc3_w"].T, precision=hp) + params["fc3_b"]


if __name__ == "__main__":
    key = jax.random.PRNGKey(0)
    params = init_params(key)
    prep = prepare_params(params)           # one-time host-side weight prep
    x = jax.random.normal(jax.random.fold_in(key, 123), (2, 3, 32, 32), jnp.float32)

    fwd = jax.jit(functools.partial(cnn_forward, prep))
    out = jax.block_until_ready(fwd(x))
    assert out.shape == (2, 10) and out.dtype == jnp.float32

    ref = np.asarray(cnn_reference(params, x))
    np.testing.assert_allclose(np.asarray(out), ref, rtol=2e-3, atol=2e-3)

    print("KERNEL_OK")
</pallas_src>

<mosaic_0001>
module attributes {stable_mosaic.version = 11 : i64} {
  func.func @conv_relu_pool_kernel(%arg0: i32, %arg1: memref<4x104x128xf32, #tpu.memory_space<vmem>>, %arg2: memref<128x128xf32, #tpu.memory_space<vmem>>, %arg3: memref<1x8xf32, #tpu.memory_space<vmem>>, %arg4: memref<104x8xf32, #tpu.memory_space<vmem>>) attributes {dimension_semantics = [#tpu.dimension_semantics<parallel>], iteration_bounds = array<i64: 4>, scalar_prefetch = 0 : i64, scratch_operands = 0 : i64, tpu.core_type = #tpu.core_type<tc>, window_params = [{transform_indices = @transform_0, window_bounds = array<i64: 4, 104, 128>}, {pipeline_mode = #tpu.pipeline_mode<synchronous>, transform_indices = @transform_1, window_bounds = array<i64: 128, 128>}, {pipeline_mode = #tpu.pipeline_mode<synchronous>, transform_indices = @transform_2, window_bounds = array<i64: 1, 8>}, {transform_indices = @transform_3, window_bounds = array<i64: 104, 8>}]} {
    %c0 = arith.constant 0 : index
    %c0_0 = arith.constant 0 : index
    %0 = vector.load %arg2[%c0, %c0_0] : memref<128x128xf32, #tpu.memory_space<vmem>>, vector<128x128xf32>
    %c0_1 = arith.constant 0 : index
    %c0_2 = arith.constant 0 : index
    %c0_3 = arith.constant 0 : index
    %1 = vector.load %arg1[%c0_1, %c0_2, %c0_3] : memref<4x104x128xf32, #tpu.memory_space<vmem>>, vector<1x104x128xf32>
    %2 = vector.shape_cast %1 : vector<1x104x128xf32> to vector<104x128xf32>
    %cst = arith.constant dense<0.000000e+00> : vector<104x128xf32>
    %3 = tpu.matmul %2, %0, %cst {dimension_numbers = #tpu.dot_dimension_numbers<[1], [0], [0], [1], [0, 0, 1, 1], [], []>} : vector<104x128xf32>, vector<128x128xf32>, vector<104x128xf32> -> vector<104x128xf32>
    %c1 = arith.constant 1 : index
    %c0_4 = arith.constant 0 : index
    %c0_5 = arith.constant 0 : index
    %4 = vector.load %arg1[%c1, %c0_4, %c0_5] : memref<4x104x128xf32, #tpu.memory_space<vmem>>, vector<1x104x128xf32>
    %5 = vector.shape_cast %4 : vector<1x104x128xf32> to vector<104x128xf32>
    %cst_6 = arith.constant dense<0.000000e+00> : vector<104x128xf32>
    %6 = tpu.matmul %5, %0, %cst_6 {dimension_numbers = #tpu.dot_dimension_numbers<[1], [0], [0], [1], [0, 0, 1, 1], [], []>} : vector<104x128xf32>, vector<128x128xf32>, vector<104x128xf32> -> vector<104x128xf32>
    %7 = arith.maximumf %3, %6 : vector<104x128xf32>
    %c2 = arith.constant 2 : index
    %c0_7 = arith.constant 0 : index
    %c0_8 = arith.constant 0 : index
    %8 = vector.load %arg1[%c2, %c0_7, %c0_8] : memref<4x104x128xf32, #tpu.memory_space<vmem>>, vector<1x104x128xf32>
    %9 = vector.shape_cast %8 : vector<1x104x128xf32> to vector<104x128xf32>
    %cst_9 = arith.constant dense<0.000000e+00> : vector<104x128xf32>
    %10 = tpu.matmul %9, %0, %cst_9 {dimension_numbers = #tpu.dot_dimension_numbers<[1], [0], [0], [1], [0, 0, 1, 1], [], []>} : vector<104x128xf32>, vector<128x128xf32>, vector<104x128xf32> -> vector<104x128xf32>
    %11 = arith.maximumf %7, %10 : vector<104x128xf32>
    %c3 = arith.constant 3 : index
    %c0_10 = arith.constant 0 : index
    %c0_11 = arith.constant 0 : index
    %12 = vector.load %arg1[%c3, %c0_10, %c0_11] : memref<4x104x128xf32, #tpu.memory_space<vmem>>, vector<1x104x128xf32>
    %13 = vector.shape_cast %12 : vector<1x104x128xf32> to vector<104x128xf32>
    %cst_12 = arith.constant dense<0.000000e+00> : vector<104x128xf32>
    %14 = tpu.matmul %13, %0, %cst_12 {dimension_numbers = #tpu.dot_dimension_numbers<[1], [0], [0], [1], [0, 0, 1, 1], [], []>} : vector<104x128xf32>, vector<128x128xf32>, vector<104x128xf32> -> vector<104x128xf32>
    %15 = arith.maximumf %11, %14 : vector<104x128xf32>
    %16 = vector.extract_strided_slice %15 {offsets = [0, 0], sizes = [104, 8], strides = [1, 1]} : vector<104x128xf32> to vector<104x8xf32>
    %c0_13 = arith.constant 0 : index
    %c0_14 = arith.constant 0 : index
    %17 = vector.load %arg3[%c0_13, %c0_14] : memref<1x8xf32, #tpu.memory_space<vmem>>, vector<1x8xf32>
    %18 = vector.broadcast %17 : vector<1x8xf32> to vector<104x8xf32>
    %19 = arith.addf %16, %18 : vector<104x8xf32>
    %cst_15 = arith.constant 0.000000e+00 : f32
    %20 = vector.broadcast %cst_15 : f32 to vector<104x8xf32>
    %21 = arith.maximumf %19, %20 : vector<104x8xf32>
    %c0_16 = arith.constant 0 : index
    %c0_17 = arith.constant 0 : index
    %22 = vector.load %arg4[%c0_16, %c0_17] : memref<104x8xf32, #tpu.memory_space<vmem>>, vector<104x8xf32>
    tpu.vector_store %arg4[%c0_16, %c0_17], %21 {strides = array<i32>} : memref<104x8xf32, #tpu.memory_space<vmem>>, vector<104x8xf32>,
    return
  }
  func.func @transform_0(%arg0: i32) -> (i32, i32, i32) {
    %c0_i32 = arith.constant 0 : i32
    %c0_i32_0 = arith.constant 0 : i32
    %c0_i32_1 = arith.constant 0 : i32
    return %c0_i32, %arg0, %c0_i32_0 : i32, i32, i32
  }
  func.func @transform_1(%arg0: i32) -> (i32, i32) {
    %c0_i32 = arith.constant 0 : i32
    %c0_i32_0 = arith.constant 0 : i32
    %c0_i32_1 = arith.constant 0 : i32
    return %c0_i32, %c0_i32_0 : i32, i32
  }
  func.func @transform_2(%arg0: i32) -> (i32, i32) {
    %c0_i32 = arith.constant 0 : i32
    %c0_i32_0 = arith.constant 0 : i32
    %c0_i32_1 = arith.constant 0 : i32
    return %c0_i32, %c0_i32_0 : i32, i32
  }
  func.func @transform_3(%arg0: i32) -> (i32, i32) {
    %c0_i32 = arith.constant 0 : i32
    %c0_i32_0 = arith.constant 0 : i32
    return %arg0, %c0_i32 : i32, i32
  }
}

module attributes {stable_mosaic.version = 11 : i64} {
  func.func @conv_relu_pool_kernel(%arg0: i32, %arg1: memref<4x16x256xf32, #tpu.memory_space<vmem>>, %arg2: memref<256x128xf32, #tpu.memory_space<vmem>>, %arg3: memref<1x16xf32, #tpu.memory_space<vmem>>, %arg4: memref<16x16xf32, #tpu.memory_space<vmem>>) attributes {dimension_semantics = [#tpu.dimension_semantics<parallel>], iteration_bounds = array<i64: 4>, scalar_prefetch = 0 : i64, scratch_operands = 0 : i64, tpu.core_type = #tpu.core_type<tc>, window_params = [{transform_indices = @transform_0, window_bounds = array<i64: 4, 16, 256>}, {pipeline_mode = #tpu.pipeline_mode<synchronous>, transform_indices = @transform_1, window_bounds = array<i64: 256, 128>}, {pipeline_mode = #tpu.pipeline_mode<synchronous>, transform_indices = @transform_2, window_bounds = array<i64: 1, 16>}, {transform_indices = @transform_3, window_bounds = array<i64: 16, 16>}]} {
    %c0 = arith.constant 0 : index
    %c0_0 = arith.constant 0 : index
    %0 = vector.load %arg2[%c0, %c0_0] : memref<256x128xf32, #tpu.memory_space<vmem>>, vector<256x128xf32>
    %c0_1 = arith.constant 0 : index
    %c0_2 = arith.constant 0 : index
    %c0_3 = arith.constant 0 : index
    %1 = vector.load %arg1[%c0_1, %c0_2, %c0_3] : memref<4x16x256xf32, #tpu.memory_space<vmem>>, vector<1x16x256xf32>
    %2 = vector.shape_cast %1 : vector<1x16x256xf32> to vector<16x256xf32>
    %cst = arith.constant dense<0.000000e+00> : vector<16x128xf32>
    %3 = tpu.matmul %2, %0, %cst {dimension_numbers = #tpu.dot_dimension_numbers<[1], [0], [0], [1], [0, 0, 1, 1], [], []>} : vector<16x256xf32>, vector<256x128xf32>, vector<16x128xf32> -> vector<16x128xf32>
    %c1 = arith.constant 1 : index
    %c0_4 = arith.constant 0 : index
    %c0_5 = arith.constant 0 : index
    %4 = vector.load %arg1[%c1, %c0_4, %c0_5] : memref<4x16x256xf32, #tpu.memory_space<vmem>>, vector<1x16x256xf32>
    %5 = vector.shape_cast %4 : vector<1x16x256xf32> to vector<16x256xf32>
    %cst_6 = arith.constant dense<0.000000e+00> : vector<16x128xf32>
    %6 = tpu.matmul %5, %0, %cst_6 {dimension_numbers = #tpu.dot_dimension_numbers<[1], [0], [0], [1], [0, 0, 1, 1], [], []>} : vector<16x256xf32>, vector<256x128xf32>, vector<16x128xf32> -> vector<16x128xf32>
    %7 = arith.maximumf %3, %6 : vector<16x128xf32>
    %c2 = arith.constant 2 : index
    %c0_7 = arith.constant 0 : index
    %c0_8 = arith.constant 0 : index
    %8 = vector.load %arg1[%c2, %c0_7, %c0_8] : memref<4x16x256xf32, #tpu.memory_space<vmem>>, vector<1x16x256xf32>
    %9 = vector.shape_cast %8 : vector<1x16x256xf32> to vector<16x256xf32>
    %cst_9 = arith.constant dense<0.000000e+00> : vector<16x128xf32>
    %10 = tpu.matmul %9, %0, %cst_9 {dimension_numbers = #tpu.dot_dimension_numbers<[1], [0], [0], [1], [0, 0, 1, 1], [], []>} : vector<16x256xf32>, vector<256x128xf32>, vector<16x128xf32> -> vector<16x128xf32>
    %11 = arith.maximumf %7, %10 : vector<16x128xf32>
    %c3 = arith.constant 3 : index
    %c0_10 = arith.constant 0 : index
    %c0_11 = arith.constant 0 : index
    %12 = vector.load %arg1[%c3, %c0_10, %c0_11] : memref<4x16x256xf32, #tpu.memory_space<vmem>>, vector<1x16x256xf32>
    %13 = vector.shape_cast %12 : vector<1x16x256xf32> to vector<16x256xf32>
    %cst_12 = arith.constant dense<0.000000e+00> : vector<16x128xf32>
    %14 = tpu.matmul %13, %0, %cst_12 {dimension_numbers = #tpu.dot_dimension_numbers<[1], [0], [0], [1], [0, 0, 1, 1], [], []>} : vector<16x256xf32>, vector<256x128xf32>, vector<16x128xf32> -> vector<16x128xf32>
    %15 = arith.maximumf %11, %14 : vector<16x128xf32>
    %16 = vector.extract_strided_slice %15 {offsets = [0, 0], sizes = [16, 16], strides = [1, 1]} : vector<16x128xf32> to vector<16x16xf32>
    %c0_13 = arith.constant 0 : index
    %c0_14 = arith.constant 0 : index
    %17 = vector.load %arg3[%c0_13, %c0_14] : memref<1x16xf32, #tpu.memory_space<vmem>>, vector<1x16xf32>
    %18 = vector.broadcast %17 : vector<1x16xf32> to vector<16x16xf32>
    %19 = arith.addf %16, %18 : vector<16x16xf32>
    %cst_15 = arith.constant 0.000000e+00 : f32
    %20 = vector.broadcast %cst_15 : f32 to vector<16x16xf32>
    %21 = arith.maximumf %19, %20 : vector<16x16xf32>
    %c0_16 = arith.constant 0 : index
    %c0_17 = arith.constant 0 : index
    %22 = vector.load %arg4[%c0_16, %c0_17] : memref<16x16xf32, #tpu.memory_space<vmem>>, vector<16x16xf32>
    tpu.vector_store %arg4[%c0_16, %c0_17], %21 {strides = array<i32>} : memref<16x16xf32, #tpu.memory_space<vmem>>, vector<16x16xf32>,
    return
  }
  func.func @transform_0(%arg0: i32) -> (i32, i32, i32) {
    %c0_i32 = arith.constant 0 : i32
    %c0_i32_0 = arith.constant 0 : i32
    %c0_i32_1 = arith.constant 0 : i32
    return %c0_i32, %arg0, %c0_i32_0 : i32, i32, i32
  }
  func.func @transform_1(%arg0: i32) -> (i32, i32) {
    %c0_i32 = arith.constant 0 : i32
    %c0_i32_0 = arith.constant 0 : i32
    %c0_i32_1 = arith.constant 0 : i32
    return %c0_i32, %c0_i32_0 : i32, i32
  }
  func.func @transform_2(%arg0: i32) -> (i32, i32) {
    %c0_i32 = arith.constant 0 : i32
    %c0_i32_0 = arith.constant 0 : i32
    %c0_i32_1 = arith.constant 0 : i32
    return %c0_i32, %c0_i32_0 : i32, i32
  }
  func.func @transform_3(%arg0: i32) -> (i32, i32) {
    %c0_i32 = arith.constant 0 : i32
    %c0_i32_0 = arith.constant 0 : i32
    return %arg0, %c0_i32 : i32, i32
  }
}

module attributes {stable_mosaic.version = 11 : i64} {
  func.func @mlp_kernel(%arg0: i32, %arg1: memref<8x512xf32, #tpu.memory_space<vmem>>, %arg2: memref<512x128xf32, #tpu.memory_space<vmem>>, %arg3: memref<1x128xf32, #tpu.memory_space<vmem>>, %arg4: memref<128x128xf32, #tpu.memory_space<vmem>>, %arg5: memref<1x128xf32, #tpu.memory_space<vmem>>, %arg6: memref<128x128xf32, #tpu.memory_space<vmem>>, %arg7: memref<1x128xf32, #tpu.memory_space<vmem>>, %arg8: memref<8x128xf32, #tpu.memory_space<vmem>>) attributes {dimension_semantics = [#tpu.dimension_semantics<parallel>], iteration_bounds = array<i64: 1>, scalar_prefetch = 0 : i64, scratch_operands = 0 : i64, tpu.core_type = #tpu.core_type<tc>, window_params = [{transform_indices = @transform_0, window_bounds = array<i64: 8, 512>}, {pipeline_mode = #tpu.pipeline_mode<synchronous>, transform_indices = @transform_1, window_bounds = array<i64: 512, 128>}, {pipeline_mode = #tpu.pipeline_mode<synchronous>, transform_indices = @transform_2, window_bounds = array<i64: 1, 128>}, {pipeline_mode = #tpu.pipeline_mode<synchronous>, transform_indices = @transform_3, window_bounds = array<i64: 128, 128>}, {pipeline_mode = #tpu.pipeline_mode<synchronous>, transform_indices = @transform_4, window_bounds = array<i64: 1, 128>}, {pipeline_mode = #tpu.pipeline_mode<synchronous>, transform_indices = @transform_5, window_bounds = array<i64: 128, 128>}, {pipeline_mode = #tpu.pipeline_mode<synchronous>, transform_indices = @transform_6, window_bounds = array<i64: 1, 128>}, {transform_indices = @transform_7, window_bounds = array<i64: 8, 128>}]} {
    %c0 = arith.constant 0 : index
    %c0_0 = arith.constant 0 : index
    %0 = vector.load %arg1[%c0, %c0_0] : memref<8x512xf32, #tpu.memory_space<vmem>>, vector<8x512xf32>
    %c0_1 = arith.constant 0 : index
    %c0_2 = arith.constant 0 : index
    %1 = vector.load %arg2[%c0_1, %c0_2] : memref<512x128xf32, #tpu.memory_space<vmem>>, vector<512x128xf32>
    %cst = arith.constant dense<0.000000e+00> : vector<8x128xf32>
    %2 = tpu.matmul %0, %1, %cst {dimension_numbers = #tpu.dot_dimension_numbers<[1], [0], [0], [1], [0, 0, 1, 1], [], []>} : vector<8x512xf32>, vector<512x128xf32>, vector<8x128xf32> -> vector<8x128xf32>
    %c0_3 = arith.constant 0 : index
    %c0_4 = arith.constant 0 : index
    %3 = vector.load %arg3[%c0_3, %c0_4] : memref<1x128xf32, #tpu.memory_space<vmem>>, vector<1x128xf32>
    %4 = vector.broadcast %3 : vector<1x128xf32> to vector<8x128xf32>
    %5 = arith.addf %2, %4 : vector<8x128xf32>
    %cst_5 = arith.constant 0.000000e+00 : f32
    %6 = vector.broadcast %cst_5 : f32 to vector<8x128xf32>
    %7 = arith.maximumf %5, %6 : vector<8x128xf32>
    %c0_6 = arith.constant 0 : index
    %c0_7 = arith.constant 0 : index
    %8 = vector.load %arg4[%c0_6, %c0_7] : memref<128x128xf32, #tpu.memory_space<vmem>>, vector<128x128xf32>
    %cst_8 = arith.constant dense<0.000000e+00> : vector<8x128xf32>
    %9 = tpu.matmul %7, %8, %cst_8 {dimension_numbers = #tpu.dot_dimension_numbers<[1], [0], [0], [1], [0, 0, 1, 1], [], []>} : vector<8x128xf32>, vector<128x128xf32>, vector<8x128xf32> -> vector<8x128xf32>
    %c0_9 = arith.constant 0 : index
    %c0_10 = arith.constant 0 : index
    %10 = vector.load %arg5[%c0_9, %c0_10] : memref<1x128xf32, #tpu.memory_space<vmem>>, vector<1x128xf32>
    %11 = vector.broadcast %10 : vector<1x128xf32> to vector<8x128xf32>
    %12 = arith.addf %9, %11 : vector<8x128xf32>
    %cst_11 = arith.constant 0.000000e+00 : f32
    %13 = vector.broadcast %cst_11 : f32 to vector<8x128xf32>
    %14 = arith.maximumf %12, %13 : vector<8x128xf32>
    %c0_12 = arith.constant 0 : index
    %c0_13 = arith.constant 0 : index
    %15 = vector.load %arg6[%c0_12, %c0_13] : memref<128x128xf32, #tpu.memory_space<vmem>>, vector<128x128xf32>
    %cst_14 = arith.constant dense<0.000000e+00> : vector<8x128xf32>
    %16 = tpu.matmul %14, %15, %cst_14 {dimension_numbers = #tpu.dot_dimension_numbers<[1], [0], [0], [1], [0, 0, 1, 1], [], []>} : vector<8x128xf32>, vector<128x128xf32>, vector<8x128xf32> -> vector<8x128xf32>
    %c0_15 = arith.constant 0 : index
    %c0_16 = arith.constant 0 : index
    %17 = vector.load %arg7[%c0_15, %c0_16] : memref<1x128xf32, #tpu.memory_space<vmem>>, vector<1x128xf32>
    %18 = vector.broadcast %17 : vector<1x128xf32> to vector<8x128xf32>
    %19 = arith.addf %16, %18 : vector<8x128xf32>
    %c0_17 = arith.constant 0 : index
    %c0_18 = arith.constant 0 : index
    %20 = vector.load %arg8[%c0_17, %c0_18] : memref<8x128xf32, #tpu.memory_space<vmem>>, vector<8x128xf32>
    tpu.vector_store %arg8[%c0_17, %c0_18], %19 {strides = array<i32>} : memref<8x128xf32, #tpu.memory_space<vmem>>, vector<8x128xf32>,
    return
  }
  func.func @transform_0(%arg0: i32) -> (i32, i32) {
    %c0_i32 = arith.constant 0 : i32
    %c0_i32_0 = arith.constant 0 : i32
    return %arg0, %c0_i32 : i32, i32
  }
  func.func @transform_1(%arg0: i32) -> (i32, i32) {
    %c0_i32 = arith.constant 0 : i32
    %c0_i32_0 = arith.constant 0 : i32
    %c0_i32_1 = arith.constant 0 : i32
    return %c0_i32, %c0_i32_0 : i32, i32
  }
  func.func @transform_2(%arg0: i32) -> (i32, i32) {
    %c0_i32 = arith.constant 0 : i32
    %c0_i32_0 = arith.constant 0 : i32
    %c0_i32_1 = arith.constant 0 : i32
    return %c0_i32, %c0_i32_0 : i32, i32
  }
  func.func @transform_3(%arg0: i32) -> (i32, i32) {
    %c0_i32 = arith.constant 0 : i32
    %c0_i32_0 = arith.constant 0 : i32
    %c0_i32_1 = arith.constant 0 : i32
    return %c0_i32, %c0_i32_0 : i32, i32
  }
  func.func @transform_4(%arg0: i32) -> (i32, i32) {
    %c0_i32 = arith.constant 0 : i32
    %c0_i32_0 = arith.constant 0 : i32
    %c0_i32_1 = arith.constant 0 : i32
    return %c0_i32, %c0_i32_0 : i32, i32
  }
  func.func @transform_5(%arg0: i32) -> (i32, i32) {
    %c0_i32 = arith.constant 0 : i32
    %c0_i32_0 = arith.constant 0 : i32
    %c0_i32_1 = arith.constant 0 : i32
    return %c0_i32, %c0_i32_0 : i32, i32
  }
  func.func @transform_6(%arg0: i32) -> (i32, i32) {
    %c0_i32 = arith.constant 0 : i32
    %c0_i32_0 = arith.constant 0 : i32
    %c0_i32_1 = arith.constant 0 : i32
    return %c0_i32, %c0_i32_0 : i32, i32
  }
  func.func @transform_7(%arg0: i32) -> (i32, i32) {
    %c0_i32 = arith.constant 0 : i32
    %c0_i32_0 = arith.constant 0 : i32
    return %arg0, %c0_i32 : i32, i32
  }
}

</mosaic_0001>

<bundles_post_ra>
// kernel: cnn_forward.3
= control target key start
LH: loop header
LB: loop body
LE: loop exit
PB: predicated region body
PF: predicated region fallthrough
CT: control target
= control target key end

     0   :  { %s1676_s12 = smov 0   ;;  %s1678_s13 = smov 0   ;;  %s2320_s0 = inlined_call_operand.vmem [shape: f32[4,416,128], index: 0, kind: input, shape index: {}]   ;;  %s2321_s1 = inlined_call_operand.vmem [shape: f32[128,128], index: 1, kind: input, shape index: {}]   ;;  %s2322_s2 = inlined_call_operand.vmem [shape: f32[1,8], index: 2, kind: input, shape index: {}]   ;;  %s2323_s3 = inlined_call_operand.vmem [shape: f32[416,8], index: 3, kind: output, shape index: {}]  }
   0x1   :  { %s1680_s14 = smov 0  }
   0x2 LB: > { %s1152_s15 = sadd.s32 4294967295, %s1652_s14   ;;  %s1693_s16 = sadd.s32 1, %s1652_s14   ;;  %s1652_s14 = sphi %s1680_s14, %s2326_s14   ;;  %s1648_s13 = sphi %s1678_s13, %s2325_s13   ;;  %s1644_s12 = sphi %s1676_s12, %s2324_s12  }
   0x3   : > { %s17_s17 = ssub.s32 %s1652_s14, %s1693_s16  ;;  %s20_s18 = sadd.s32 1, %s1648_s13 }
   0x4   : > { %p18_p0 = scmp.eq.s32.totalorder %s17_s17, 0  ;;  %p27_p1 = scmp.ne.s32.totalorder %s1648_s13, %s1644_s12 }
   0x5   : > { %p28_p2 = scmp.eq.s32.totalorder %s1652_s14, 0  ;;  %p1155_p4 = scmp.ge.s32.totalorder %s1652_s14, 4 }
   0x6   : > { %s1702_s19 = scalar_select %p18_p0, %s1648_s13, %s20_s18  }
   0x7   : > { %p29_p3 = por %p28_p2, %p27_p1  ;;  %127 = sbr.rel (%p1155_p4) target bundleno = 43 (0x2b), region = 24 }
   0xc   : > { %130 = sbr.rel (!%p29_p3) target bundleno = 43 (0x2b), region = 28  ;;  %s132_s20 = sand.u32 (%p29_p3), 1, %s1648_s13  }
   0xd   : > { %s1201_s21 = smul.u32 (%p29_p3), 104, %s1652_s14 }
   0xe   : > { %s1602_s22 = smul.u32 (%p29_p3), 416, %s132_s20 }
   0xf   : > { %s1710_s25 = scalar_lea.vmem (%p29_p3), %s2320_s0, %s1201_s21 }
  0x10   : > { %v268_v0 = vld [vmem:[%s1710_s25] sm:$0xff] (%p29_p3)  ;;  %v270_v1 = vld [vmem:[%s1710_s25 + $0x8] sm:$0xff] (%p29_p3)  ;;  %v272_v2 = vld [vmem:[%s1710_s25 + $0x10] sm:$0xff] (%p29_p3)  ;;  %s1715_s26 = scalar_lea.vmem (%p29_p3), [#allocation2], %s1602_s22 }
  0x11   : > { %269 = vst [vmem:[%s1715_s26] sm:$0xff] %v268_v0  ;;  %271 = vst [vmem:[%s1715_s26 + $0x8] sm:$0xff] %v270_v1  ;;  %v274_v3 = vld [vmem:[%s1710_s25 + $0x18] sm:$0xff]  ;;  %v276_v4 = vld [vmem:[%s1710_s25 + $0x20] sm:$0xff] }
  0x12   : > { %273 = vst [vmem:[%s1715_s26 + $0x10] sm:$0xff] %v272_v2  ;;  %v278_v5 = vld [vmem:[%s1710_s25 + $0x28] sm:$0xff]  ;;  %275 = vst [vmem:[%s1715_s26 + $0x18] sm:$0xff] %v274_v3  ;;  %v280_v6 = vld [vmem:[%s1710_s25 + $0x30] sm:$0xff] }
  0x13   : > { %277 = vst [vmem:[%s1715_s26 + $0x20] sm:$0xff] %v276_v4  ;;  %279 = vst [vmem:[%s1715_s26 + $0x28] sm:$0xff] %v278_v5  ;;  %v282_v7 = vld [vmem:[%s1710_s25 + $0x38] sm:$0xff]  ;;  %v284_v8 = vld [vmem:[%s1710_s25 + $0x40] sm:$0xff] }
  0x14   : > { %281 = vst [vmem:[%s1715_s26 + $0x30] sm:$0xff] %v280_v6  ;;  %283 = vst [vmem:[%s1715_s26 + $0x38] sm:$0xff] %v282_v7  ;;  %v286_v9 = vld [vmem:[%s1710_s25 + $0x48] sm:$0xff]  ;;  %v288_v10 = vld [vmem:[%s1710_s25 + $0x50] sm:$0xff] }
  0x15   : > { %285 = vst [vmem:[%s1715_s26 + $0x40] sm:$0xff] %v284_v8  ;;  %v290_v11 = vld [vmem:[%s1710_s25 + $0x58] sm:$0xff]  ;;  %287 = vst [vmem:[%s1715_s26 + $0x48] sm:$0xff] %v286_v9  ;;  %v292_v12 = vld [vmem:[%s1710_s25 + $0x60] sm:$0xff] }
  0x16   : > { %289 = vst [vmem:[%s1715_s26 + $0x50] sm:$0xff] %v288_v10  ;;  %291 = vst [vmem:[%s1715_s26 + $0x58] sm:$0xff] %v290_v11  ;;  %v294_v13 = vld [vmem:[%s1710_s25 + $0x1a0] sm:$0xff]  ;;  %v296_v14 = vld [vmem:[%s1710_s25 + $0x1a8] sm:$0xff] }
  0x17   : > { %293 = vst [vmem:[%s1715_s26 + $0x60] sm:$0xff] %v292_v12  ;;  %295 = vst [vmem:[%s1715_s26 + $0x68] sm:$0xff] %v294_v13  ;;  %v298_v15 = vld [vmem:[%s1710_s25 + $0x1b0] sm:$0xff]  ;;  %v300_v16 = vld [vmem:[%s1710_s25 + $0x1b8] sm:$0xff] }
  0x18   : > { %297 = vst [vmem:[%s1715_s26 + $0x70] sm:$0xff] %v296_v14  ;;  %v302_v17 = vld [vmem:[%s1710_s25 + $0x1c0] sm:$0xff]  ;;  %299 = vst [vmem:[%s1715_s26 + $0x78] sm:$0xff] %v298_v15  ;;  %v304_v18 = vld [vmem:[%s1710_s25 + $0x1c8] sm:$0xff] }
  0x19   : > { %301 = vst [vmem:[%s1715_s26 + $0x80] sm:$0xff] %v300_v16  ;;  %303 = vst [vmem:[%s1715_s26 + $0x88] sm:$0xff] %v302_v17  ;;  %v306_v19 = vld [vmem:[%s1710_s25 + $0x1d0] sm:$0xff]  ;;  %v308_v20 = vld [vmem:[%s1710_s25 + $0x1d8] sm:$0xff] }
  0x1a   : > { %305 = vst [vmem:[%s1715_s26 + $0x90] sm:$0xff] %v304_v18  ;;  %307 = vst [vmem:[%s1715_s26 + $0x98] sm:$0xff] %v306_v19  ;;  %v310_v21 = vld [vmem:[%s1710_s25 + $0x1e0] sm:$0xff]  ;;  %v312_v22 = vld [vmem:[%s1710_s25 + $0x1e8] sm:$0xff] }
  0x1b   : > { %309 = vst [vmem:[%s1715_s26 + $0xa0] sm:$0xff] %v308_v20  ;;  %v314_v23 = vld [vmem:[%s1710_s25 + $0x1f0] sm:$0xff]  ;;  %311 = vst [vmem:[%s1715_s26 + $0xa8] sm:$0xff] %v310_v21  ;;  %v316_v24 = vld [vmem:[%s1710_s25 + $0x1f8] sm:$0xff] }
  0x1c   : > { %313 = vst [vmem:[%s1715_s26 + $0xb0] sm:$0xff] %v312_v22  ;;  %315 = vst [vmem:[%s1715_s26 + $0xb8] sm:$0xff] %v314_v23  ;;  %v318_v25 = vld [vmem:[%s1710_s25 + $0x200] sm:$0xff]  ;;  %v322_v27 = vld [vmem:[%s1710_s25 + $0x348] sm:$0xff] }
  0x1d   : > { %v320_v26 = vld [vmem:[%s1710_s25 + $0x340] sm:$0xff]  ;;  %317 = vst [vmem:[%s1715_s26 + $0xc0] sm:$0xff] %v316_v24  ;;  %319 = vst [vmem:[%s1715_s26 + $0xc8] sm:$0xff] %v318_v25  ;;  %v324_v28 = vld [vmem:[%s1710_s25 + $0x350] sm:$0xff] }
  0x1e   : > { %321 = vst [vmem:[%s1715_s26 + $0xd0] sm:$0xff] %v320_v26  ;;  %v326_v29 = vld [vmem:[%s1710_s25 + $0x358] sm:$0xff]  ;;  %323 = vst [vmem:[%s1715_s26 + $0xd8] sm:$0xff] %v322_v27  ;;  %v328_v30 = vld [vmem:[%s1710_s25 + $0x360] sm:$0xff] }
  0x1f   : > { %325 = vst [vmem:[%s1715_s26 + $0xe0] sm:$0xff] %v324_v28  ;;  %327 = vst [vmem:[%s1715_s26 + $0xe8] sm:$0xff] %v326_v29  ;;  %v330_v31 = vld [vmem:[%s1710_s25 + $0x368] sm:$0xff]  ;;  %v332_v32 = vld [vmem:[%s1710_s25 + $0x370] sm:$0xff] }
  0x20   : > { %329 = vst [vmem:[%s1715_s26 + $0xf0] sm:$0xff] %v328_v30  ;;  %331 = vst [vmem:[%s1715_s26 + $0xf8] sm:$0xff] %v330_v31  ;;  %v334_v33 = vld [vmem:[%s1710_s25 + $0x378] sm:$0xff]  ;;  %v336_v34 = vld [vmem:[%s1710_s25 + $0x380] sm:$0xff] }
  0x21   : > { %333 = vst [vmem:[%s1715_s26 + $0x100] sm:$0xff] %v332_v32  ;;  %v338_v35 = vld [vmem:[%s1710_s25 + $0x388] sm:$0xff]  ;;  %335 = vst [vmem:[%s1715_s26 + $0x108] sm:$0xff] %v334_v33  ;;  %v340_v36 = vld [vmem:[%s1710_s25 + $0x390] sm:$0xff] }
  0x22   : > { %337 = vst [vmem:[%s1715_s26 + $0x110] sm:$0xff] %v336_v34  ;;  %339 = vst [vmem:[%s1715_s26 + $0x118] sm:$0xff] %v338_v35  ;;  %v342_v37 = vld [vmem:[%s1710_s25 + $0x398] sm:$0xff]  ;;  %v344_v38 = vld [vmem:[%s1710_s25 + $0x3a0] sm:$0xff] }
  0x23   : > { %341 = vst [vmem:[%s1715_s26 + $0x120] sm:$0xff] %v340_v36  ;;  %343 = vst [vmem:[%s1715_s26 + $0x128] sm:$0xff] %v342_v37  ;;  %v346_v39 = vld [vmem:[%s1710_s25 + $0x4e0] sm:$0xff]  ;;  %v348_v40 = vld [vmem:[%s1710_s25 + $0x4e8] sm:$0xff] }
  0x24   : > { %345 = vst [vmem:[%s1715_s26 + $0x130] sm:$0xff] %v344_v38  ;;  %v350_v41 = vld [vmem:[%s1710_s25 + $0x4f0] sm:$0xff]  ;;  %347 = vst [vmem:[%s1715_s26 + $0x138] sm:$0xff] %v346_v39  ;;  %v352_v42 = vld [vmem:[%s1710_s25 + $0x4f8] sm:$0xff] }
  0x25   : > { %349 = vst [vmem:[%s1715_s26 + $0x140] sm:$0xff] %v348_v40  ;;  %351 = vst [vmem:[%s1715_s26 + $0x148] sm:$0xff] %v350_v41  ;;  %v354_v43 = vld [vmem:[%s1710_s25 + $0x500] sm:$0xff]  ;;  %v356_v44 = vld [vmem:[%s1710_s25 + $0x508] sm:$0xff] }
  0x26   : > { %353 = vst [vmem:[%s1715_s26 + $0x150] sm:$0xff] %v352_v42  ;;  %355 = vst [vmem:[%s1715_s26 + $0x158] sm:$0xff] %v354_v43  ;;  %v358_v45 = vld [vmem:[%s1710_s25 + $0x510] sm:$0xff]  ;;  %v360_v46 = vld [vmem:[%s1710_s25 + $0x518] sm:$0xff] }
  0x27   : > { %357 = vst [vmem:[%s1715_s26 + $0x160] sm:$0xff] %v356_v44  ;;  %v362_v47 = vld [vmem:[%s1710_s25 + $0x520] sm:$0xff]  ;;  %359 = vst [vmem:[%s1715_s26 + $0x168] sm:$0xff] %v358_v45  ;;  %v364_v48 = vld [vmem:[%s1710_s25 + $0x528] sm:$0xff] }
  0x28   : > { %361 = vst [vmem:[%s1715_s26 + $0x170] sm:$0xff] %v360_v46  ;;  %363 = vst [vmem:[%s1715_s26 + $0x178] sm:$0xff] %v362_v47  ;;  %v366_v49 = vld [vmem:[%s1710_s25 + $0x530] sm:$0xff]  ;;  %v368_v50 = vld [vmem:[%s1710_s25 + $0x538] sm:$0xff] }
  0x29   : > { %365 = vst [vmem:[%s1715_s26 + $0x180] sm:$0xff] %v364_v48  ;;  %367 = vst [vmem:[%s1715_s26 + $0x188] sm:$0xff] %v366_v49  ;;  %v370_v51 = vld [vmem:[%s1710_s25 + $0x540] sm:$0xff] }
  0x2a   : > { %369 = vst [vmem:[%s1715_s26 + $0x190] sm:$0xff] %v368_v50  ;;  %371 = vst [vmem:[%s1715_s26 + $0x198] sm:$0xff] %v370_v51 }
  0x2b PF: > { %p1157_p5 = scmp.ge.s32.totalorder %s1652_s14, 1  ;;  %p376_p6 = scmp.lt.s32.totalorder %s1652_s14, 5 }
  0x2d   : > { %p377_p7 = pnand %p1157_p5, %p376_p6 }
  0x2e   : > { %s383_s28 = sand.u32 (!%p377_p7), 1, %s1644_s12   ;;  %s407_s18 = smul.u32 (!%p377_p7), 13, %s1152_s15 }
  0x2f   : > { %380 = sbr.rel (%p377_p7) target bundleno = 393 (0x189), region = 66 }
  0x30   : > { %s1603_s12 = smul.u32 (!%p377_p7), 416, %s383_s28  ;;  %p408_p8 = scmp.lt.s32.totalorder (!%p377_p7), %s407_s18, 51 }
  0x32   : > { %s1961_s17 = scalar_lea.vmem (!%p377_p7), [#allocation2], %s1603_s12 }
  0x34   : > { %v1823_v52 = vld [vmem:[%s2321_s1 + $0x78] sm:$0xff]  ;;  %v1654_v53 = vmov 0.0   ;;  %v1830_v54 = vld [vmem:[%s2321_s1 + $0x70] sm:$0xff]  ;;  %v1839_v55 = vld [vmem:[%s2321_s1 + $0x68] sm:$0xff]  ;;  %vm1655_vm0 = vmmov 0   ;;  %s2328_s18 = smov (!%p408_p8, %s407_s18), 51 }
  0x35   : > { %1318 = vmatprep.subr.mxu0 %v1654_v53  ;;  %1389 = vmatprep.subr.mxu1 %v1654_v53  ;;  %v1848_v56 = vld [vmem:[%s2321_s1 + $0x60] sm:$0xff]  ;;  %v1857_v57 = vld [vmem:[%s2321_s1 + $0x58] sm:$0xff]  ;;  %v1866_v58 = vld [vmem:[%s2321_s1 + $0x50] sm:$0xff]  ;;  %s1158_s14 = sshll.u32 %s2328_s18, 3  ;;  %vm1076_vm1 = vcmask 64512  }
  0x36   : > { %1319 = vmatpush3.msra.mxu0 %v1823_v52  ;;  %1390 = vmatpush3.msra.mxu1 %v1823_v52  ;;  %v1875_v59 = vld [vmem:[%s2321_s1 + $0x48] sm:$0xff]  ;;  %v1884_v60 = vld [vmem:[%s2321_s1 + $0x40] sm:$0xff]  ;;  %v1893_v61 = vld [vmem:[%s2321_s1 + $0x38] sm:$0xff]  ;;  %s2248_s23 = scalar_lea.vmem %s2323_s3, %s1158_s14 }
  0x37   : > { %1320 = vmatprep.subr.mxu0 %v1654_v53  ;;  %1391 = vmatprep.subr.mxu1 %v1654_v53  ;;  %v1902_v62 = vld [vmem:[%s2321_s1 + $0x30] sm:$0xff]  ;;  %v1911_v63 = vld [vmem:[%s2321_s1 + $0x28] sm:$0xff]  ;;  %v1921_v0 = vld [vmem:[%s2321_s1 + $0x20] sm:$0xff] }
  0x38   : > { %1321 = vmatpush3.msra.mxu0 %v1830_v54  ;;  %1392 = vmatpush3.msra.mxu1 %v1830_v54  ;;  %v1930_v1 = vld [vmem:[%s2321_s1 + $0x18] sm:$0xff]  ;;  %v1939_v2 = vld [vmem:[%s2321_s1 + $0x10] sm:$0xff]  ;;  %v1948_v3 = vld [vmem:[%s2321_s1 + $0x8] sm:$0xff] }
  0x39   : > { %1322 = vmatprep.subr.mxu0 %v1654_v53  ;;  %1393 = vmatprep.subr.mxu1 %v1654_v53  ;;  %v1957_v4 = vld [vmem:[%s2321_s1] sm:$0xff]  ;;  %v1159_v6 = vld [vmem:[%s1961_s17 + $0x68] sm:$0xff]  ;;  %v1160_v8 = vld [vmem:[%s1961_s17 + $0x70] sm:$0xff] }
  0x3a   : > { %1323 = vmatpush3.msra.mxu0 %v1839_v55  ;;  %1394 = vmatpush3.msra.mxu1 %v1839_v55  ;;  %v429_v5 = vld [vmem:[%s1961_s17] sm:$0xff]  ;;  %v430_v7 = vld [vmem:[%s1961_s17 + $0x8] sm:$0xff]  ;;  %v431_v9 = vld [vmem:[%s1961_s17 + $0x10] sm:$0xff] }
  0x3b   : > { %1324 = vmatprep.subr.mxu0 %v1654_v53  ;;  %1395 = vmatprep.subr.mxu1 %v1654_v53  ;;  %v1161_v10 = vld [vmem:[%s1961_s17 + $0x78] sm:$0xff]  ;;  %v1162_v12 = vld [vmem:[%s1961_s17 + $0x80] sm:$0xff]  ;;  %v1163_v14 = vld [vmem:[%s1961_s17 + $0x88] sm:$0xff] }
  0x3c   : > { %1325 = vmatpush3.msra.mxu0 %v1848_v56  ;;  %1396 = vmatpush3.msra.mxu1 %v1848_v56  ;;  %v432_v11 = vld [vmem:[%s1961_s17 + $0x18] sm:$0xff]  ;;  %v433_v13 = vld [vmem:[%s1961_s17 + $0x20] sm:$0xff]  ;;  %v434_v15 = vld [vmem:[%s1961_s17 + $0x28] sm:$0xff] }
  0x3d   : > { %1326 = vmatprep.subr.mxu0 %v1654_v53  ;;  %1397 = vmatprep.subr.mxu1 %v1654_v53  ;;  %v1164_v16 = vld [vmem:[%s1961_s17 + $0x90] sm:$0xff]  ;;  %v1165_v18 = vld [vmem:[%s1961_s17 + $0x98] sm:$0xff]  ;;  %v1166_v20 = vld [vmem:[%s1961_s17 + $0xa0] sm:$0xff] }
  0x3e   : > { %1327 = vmatpush3.msra.mxu0 %v1857_v57  ;;  %1398 = vmatpush3.msra.mxu1 %v1857_v57  ;;  %v435_v17 = vld [vmem:[%s1961_s17 + $0x30] sm:$0xff]  ;;  %v436_v19 = vld [vmem:[%s1961_s17 + $0x38] sm:$0xff]  ;;  %v437_v21 = vld [vmem:[%s1961_s17 + $0x40] sm:$0xff] }
  0x3f   : > { %1328 = vmatprep.subr.mxu0 %v1654_v53  ;;  %1399 = vmatprep.subr.mxu1 %v1654_v53  ;;  %v1167_v22 = vld [vmem:[%s1961_s17 + $0xa8] sm:$0xff]  ;;  %v1168_v24 = vld [vmem:[%s1961_s17 + $0xb0] sm:$0xff]  ;;  %v1169_v26 = vld [vmem:[%s1961_s17 + $0xb8] sm:$0xff] }
  0x40   : > { %1329 = vmatpush3.msra.mxu0 %v1866_v58  ;;  %1400 = vmatpush3.msra.mxu1 %v1866_v58  ;;  %v438_v23 = vld [vmem:[%s1961_s17 + $0x48] sm:$0xff]  ;;  %v439_v25 = vld [vmem:[%s1961_s17 + $0x50] sm:$0xff]  ;;  %v440_v27 = vld [vmem:[%s1961_s17 + $0x58] sm:$0xff] }
  0x41   : > { %1330 = vmatprep.subr.mxu0 %v1654_v53  ;;  %1401 = vmatprep.subr.mxu1 %v1654_v53  ;;  %v1170_v28 = vld [vmem:[%s1961_s17 + $0xc0] sm:$0xff]  ;;  %v1171_v30 = vld [vmem:[%s1961_s17 + $0xc8] sm:$0xff]  ;;  %v1172_v31 = vld [vmem:[%s1961_s17 + $0xd0] sm:$0xff] }
  0x42   : > { %1331 = vmatpush3.msra.mxu0 %v1875_v59  ;;  %1402 = vmatpush3.msra.mxu1 %v1875_v59  ;;  %v441_v29 = vld [vmem:[%s1961_s17 + $0x60] sm:$0xff]  ;;  %v1185_v32 = vld [vmem:[%s1961_s17 + $0x138] sm:$0xff]  ;;  %v1187_v36 = vld [vmem:[%s1961_s17 + $0x148] sm:$0xff] }
  0x43   : > { %1332 = vmatprep.subr.mxu0 %v1654_v53  ;;  %1403 = vmatprep.subr.mxu1 %v1654_v53  ;;  %v1173_v33 = vld [vmem:[%s1961_s17 + $0xd8] sm:$0xff]  ;;  %v1186_v34 = vld [vmem:[%s1961_s17 + $0x140] sm:$0xff]  ;;  %v1175_v37 = vld [vmem:[%s1961_s17 + $0xe8] sm:$0xff] }
  0x44   : > { %1333 = vmatpush3.msra.mxu0 %v1884_v60  ;;  %1404 = vmatpush3.msra.mxu1 %v1884_v60  ;;  %v1174_v35 = vld [vmem:[%s1961_s17 + $0xe0] sm:$0xff]  ;;  %v1188_v38 = vld [vmem:[%s1961_s17 + $0x150] sm:$0xff]  ;;  %v1189_v40 = vld [vmem:[%s1961_s17 + $0x158] sm:$0xff] }
  0x45   : > { %1334 = vmatprep.subr.mxu0 %v1654_v53  ;;  %1405 = vmatprep.subr.mxu1 %v1654_v53  ;;  %v1176_v39 = vld [vmem:[%s1961_s17 + $0xf0] sm:$0xff]  ;;  %v1177_v41 = vld [vmem:[%s1961_s17 + $0xf8] sm:$0xff]  ;;  %v1190_v42 = vld [vmem:[%s1961_s17 + $0x160] sm:$0xff] }
  0x46   : > { %1335 = vmatpush3.msra.mxu0 %v1893_v61  ;;  %1406 = vmatpush3.msra.mxu1 %v1893_v61  ;;  %v1178_v43 = vld [vmem:[%s1961_s17 + $0x100] sm:$0xff]  ;;  %v1191_v44 = vld [vmem:[%s1961_s17 + $0x168] sm:$0xff]  ;;  %v1192_v46 = vld [vmem:[%s1961_s17 + $0x170] sm:$0xff] }
  0x47   : > { %1336 = vmatprep.subr.mxu0 %v1654_v53  ;;  %1407 = vmatprep.subr.mxu1 %v1654_v53  ;;  %v1179_v45 = vld [vmem:[%s1961_s17 + $0x108] sm:$0xff]  ;;  %v1180_v47 = vld [vmem:[%s1961_s17 + $0x110] sm:$0xff]  ;;  %v1193_v48 = vld [vmem:[%s1961_s17 + $0x178] sm:$0xff] }
  0x48   : > { %1337 = vmatpush3.msra.mxu0 %v1902_v62  ;;  %1408 = vmatpush3.msra.mxu1 %v1902_v62  ;;  %v1181_v49 = vld [vmem:[%s1961_s17 + $0x118] sm:$0xff]  ;;  %v1194_v50 = vld [vmem:[%s1961_s17 + $0x180] sm:$0xff] }
  0x49   : > { %1338 = vmatprep.subr.mxu0 %v1654_v53  ;;  %1409 = vmatprep.subr.mxu1 %v1654_v53  ;;  %v1182_v51 = vld [vmem:[%s1961_s17 + $0x120] sm:$0xff] }
  0x4a   : > { %1339 = vmatpush3.msra.mxu0 %v1911_v63  ;;  %1410 = vmatpush3.msra.mxu1 %v1911_v63 }
  0x4b   : > { %1340 = vmatprep.subr.mxu0 %v1654_v53  ;;  %1411 = vmatprep.subr.mxu1 %v1654_v53 }
  0x4c   : > { %1341 = vmatpush3.msra.mxu0 %v1921_v0  ;;  %1412 = vmatpush3.msra.mxu1 %v1921_v0 }
  0x4d   : > { %1342 = vmatprep.subr.mxu0 %v1654_v53  ;;  %1413 = vmatprep.subr.mxu1 %v1654_v53 }
  0x4e   : > { %1343 = vmatpush3.msra.mxu0 %v1930_v1  ;;  %1414 = vmatpush3.msra.mxu1 %v1930_v1 }
  0x4f   : > { %1344 = vmatprep.subr.mxu0 %v1654_v53  ;;  %1415 = vmatprep.subr.mxu1 %v1654_v53 }
  0x50   : > { %1345 = vmatpush3.msra.mxu0 %v1939_v2  ;;  %1416 = vmatpush3.msra.mxu1 %v1939_v2 }
  0x51   : > { %1346 = vmatprep.subr.mxu0 %v1654_v53  ;;  %1417 = vmatprep.subr.mxu1 %v1654_v53 }
  0x52   : > { %1347 = vmatpush3.msra.mxu0 %v1948_v3  ;;  %1418 = vmatpush3.msra.mxu1 %v1948_v3 }
  0x53   : > { %1348 = vmatprep.subr.mxu0 %v1654_v53  ;;  %1350 = vmatprep.mubr.msk.f32.mxu0 %vm1655_vm0, %v1654_v53 }
  0x54   : > { %1349 = vmatpush3.msra.mxu0 %v1957_v4  ;;  %1419 = vmatprep.subr.mxu1 %v1654_v53 }
  0x55   : > { %1351 = vmatmul.mubr.f32.vlgmr.msra.gmra.mxu0 %v429_v5  ;;  %1420 = vmatpush3.msra.mxu1 %v1957_v4 }
  0x56   : > { %1421 = vmatprep.mubr.msk.f32.mxu1 %vm1655_vm0, %v1654_v53  ;;  %1460 = vmatprep.subr.mxu0 %v1654_v53 }
  0x57   : > { %1422 = vmatmul.mubr.f32.vlgmr.msra.gmra.mxu1 %v1159_v6  ;;  %1461 = vmatpush3.msra.mxu0 %v1823_v52 }
  0x58   : > { %1531 = vmatprep.subr.mxu1 %v1654_v53  ;;  %1353 = vmatprep.mubr.msk.f32.mxu0 %vm1655_vm0, %v1654_v53 }
  0x59   : > { %1532 = vmatpush3.msra.mxu1 %v1823_v52  ;;  %1354 = vmatmul.mubr.f32.gmra.mxu0 %v430_v7  ;;  %v1195_v52 = vld [vmem:[%s1961_s17 + $0x188] sm:$0xff] }
  0x5a   : > { %1424 = vmatprep.mubr.msk.f32.mxu1 %vm1655_vm0, %v1654_v53  ;;  %1462 = vmatprep.subr.mxu0 %v1654_v53 }
  0x5b   : > { %1425 = vmatmul.mubr.f32.gmra.mxu1 %v1160_v8  ;;  %1463 = vmatpush3.msra.mxu0 %v1830_v54 }
  0x5c   : > { %1533 = vmatprep.subr.mxu1 %v1654_v53  ;;  %1356 = vmatprep.mubr.msk.f32.mxu0 %vm1655_vm0, %v1654_v53 }
  0x5d   : > { %1464 = vmatprep.subr.mxu0 %v1654_v53  ;;  %1534 = vmatpush3.msra.mxu1 %v1830_v54  ;;  %v1183_v54 = vld [vmem:[%s1961_s17 + $0x128] sm:$0xff] }
  0x5e   : > { %1357 = vmatmul.mubr.f32.gmra.mxu0 %v431_v9  ;;  %1427 = vmatprep.mubr.msk.f32.mxu1 %vm1655_vm0, %v1654_v53 }
  0x5f   : > { %1465 = vmatpush3.msra.mxu0 %v1839_v55  ;;  %1428 = vmatmul.mubr.f32.gmra.mxu1 %v1161_v10 }
  0x60   : > { %1535 = vmatprep.subr.mxu1 %v1654_v53  ;;  %1466 = vmatprep.subr.mxu0 %v1654_v53 }
  0x61   : > { %1536 = vmatpush3.msra.mxu1 %v1839_v55  ;;  %1359 = vmatprep.mubr.msk.f32.mxu0 %vm1655_vm0, %v1654_v53  ;;  %v1196_v55 = vld [vmem:[%s1961_s17 + $0x190] sm:$0xff] }
  0x62   : > { %1467 = vmatpush3.msra.mxu0 %v1848_v56  ;;  %1430 = vmatprep.mubr.msk.f32.mxu1 %vm1655_vm0, %v1654_v53 }
  0x63   : > { %1360 = vmatmul.mubr.f32.gmra.mxu0 %v432_v11  ;;  %1537 = vmatprep.subr.mxu1 %v1654_v53 }
  0x64   : > { %1431 = vmatmul.mubr.f32.gmra.mxu1 %v1162_v12  ;;  %1468 = vmatprep.subr.mxu0 %v1654_v53 }
  0x65   : > { %1538 = vmatpush3.msra.mxu1 %v1848_v56  ;;  %1469 = vmatpush3.msra.mxu0 %v1857_v57  ;;  %v1184_v56 = vld [vmem:[%s1961_s17 + $0x130] sm:$0xff] }
  0x66   : > { %1362 = vmatprep.mubr.msk.f32.mxu0 %vm1655_vm0, %v1654_v53  ;;  %1539 = vmatprep.subr.mxu1 %v1654_v53 }
  0x67   : > { %1363 = vmatmul.mubr.f32.gmra.mxu0 %v433_v13  ;;  %1433 = vmatprep.mubr.msk.f32.mxu1 %vm1655_vm0, %v1654_v53 }
  0x68   : > { %1540 = vmatpush3.msra.mxu1 %v1857_v57  ;;  %1470 = vmatprep.subr.mxu0 %v1654_v53  ;;  %v1197_v57 = vld [vmem:[%s1961_s17 + $0x198] sm:$0xff] }
  0x69   : > { %1434 = vmatmul.mubr.f32.gmra.mxu1 %v1163_v14  ;;  %1471 = vmatpush3.msra.mxu0 %v1866_v58 }
  0x6a   : > { %1365 = vmatprep.mubr.msk.f32.mxu0 %vm1655_vm0, %v1654_v53  ;;  %1541 = vmatprep.subr.mxu1 %v1654_v53 }
  0x6b   : > { %1366 = vmatmul.mubr.f32.gmra.mxu0 %v434_v15  ;;  %1436 = vmatprep.mubr.msk.f32.mxu1 %vm1655_vm0, %v1654_v53 }
  0x6c   : > { %1472 = vmatprep.subr.mxu0 %v1654_v53  ;;  %1542 = vmatpush3.msra.mxu1 %v1866_v58 }
  0x6d   : > { %1437 = vmatmul.mubr.f32.gmra.mxu1 %v1164_v16  ;;  %1473 = vmatpush3.msra.mxu0 %v1875_v59 }
  0x6e   : > { %1543 = vmatprep.subr.mxu1 %v1654_v53  ;;  %1368 = vmatprep.mubr.msk.f32.mxu0 %vm1655_vm0, %v1654_v53 }
  0x6f   : > { %1474 = vmatprep.subr.mxu0 %v1654_v53  ;;  %1544 = vmatpush3.msra.mxu1 %v1875_v59 }
  0x70   : > { %1369 = vmatmul.mubr.f32.gmra.mxu0 %v435_v17  ;;  %1439 = vmatprep.mubr.msk.f32.mxu1 %vm1655_vm0, %v1654_v53 }
  0x71   : > { %1475 = vmatpush3.msra.mxu0 %v1884_v60  ;;  %1440 = vmatmul.mubr.f32.gmra.mxu1 %v1165_v18 }
  0x72   : > { %1545 = vmatprep.subr.mxu1 %v1654_v53  ;;  %1476 = vmatprep.subr.mxu0 %v1654_v53 }
  0x73   : > { %1546 = vmatpush3.msra.mxu1 %v1884_v60  ;;  %1371 = vmatprep.mubr.msk.f32.mxu0 %vm1655_vm0, %v1654_v53 }
  0x74   : > { %1477 = vmatpush3.msra.mxu0 %v1893_v61  ;;  %1442 = vmatprep.mubr.msk.f32.mxu1 %vm1655_vm0, %v1654_v53 }
  0x75   : > { %1372 = vmatmul.mubr.f32.gmra.mxu0 %v436_v19  ;;  %1547 = vmatprep.subr.mxu1 %v1654_v53 }
  0x76   : > { %1443 = vmatmul.mubr.f32.gmra.mxu1 %v1166_v20  ;;  %1478 = vmatprep.subr.mxu0 %v1654_v53 }
  0x77   : > { %1548 = vmatpush3.msra.mxu1 %v1893_v61  ;;  %1374 = vmatprep.mubr.msk.f32.mxu0 %vm1655_vm0, %v1654_v53 }
  0x78   : > { %1479 = vmatpush3.msra.mxu0 %v1902_v62  ;;  %1445 = vmatprep.mubr.msk.f32.mxu1 %vm1655_vm0, %v1654_v53 }
  0x79   : > { %1375 = vmatmul.mubr.f32.gmra.mxu0 %v437_v21  ;;  %1549 = vmatprep.subr.mxu1 %v1654_v53 }
  0x7a   : > { %1446 = vmatmul.mubr.f32.gmra.mxu1 %v1167_v22  ;;  %1480 = vmatprep.subr.mxu0 %v1654_v53 }
  0x7b   : > { %1550 = vmatpush3.msra.mxu1 %v1902_v62  ;;  %1481 = vmatpush3.msra.mxu0 %v1911_v63 }
  0x7c   : > { %1377 = vmatprep.mubr.msk.f32.mxu0 %vm1655_vm0, %v1654_v53  ;;  %1551 = vmatprep.subr.mxu1 %v1654_v53 }
  0x7d   : > { %1378 = vmatmul.mubr.f32.gmra.mxu0 %v438_v23  ;;  %1448 = vmatprep.mubr.msk.f32.mxu1 %vm1655_vm0, %v1654_v53 }
  0x7e   : > { %1482 = vmatprep.subr.mxu0 %v1654_v53  ;;  %1552 = vmatpush3.msra.mxu1 %v1911_v63 }
  0x7f   : > { %1449 = vmatmul.mubr.f32.gmra.mxu1 %v1168_v24  ;;  %1483 = vmatpush3.msra.mxu0 %v1921_v0 }
  0x80   : > { %1553 = vmatprep.subr.mxu1 %v1654_v53  ;;  %1380 = vmatprep.mubr.msk.f32.mxu0 %vm1655_vm0, %v1654_v53 }
  0x81   : > { %1484 = vmatprep.subr.mxu0 %v1654_v53  ;;  %1554 = vmatpush3.msra.mxu1 %v1921_v0 }
  0x82   : > { %1381 = vmatmul.mubr.f32.gmra.mxu0 %v439_v25  ;;  %1451 = vmatprep.mubr.msk.f32.mxu1 %vm1655_vm0, %v1654_v53 }
  0x83   : > { %1485 = vmatpush3.msra.mxu0 %v1930_v1  ;;  %1452 = vmatmul.mubr.f32.gmra.mxu1 %v1169_v26 }
  0x84   : > { %1555 = vmatprep.subr.mxu1 %v1654_v53  ;;  %1383 = vmatprep.mubr.msk.f32.mxu0 %vm1655_vm0, %v1654_v53 }
  0x85   : > { %1556 = vmatpush3.msra.mxu1 %v1930_v1  ;;  %1486 = vmatprep.subr.mxu0 %v1654_v53 }
  0x86   : > { %1384 = vmatmul.mubr.f32.gmra.mxu0 %v440_v27  ;;  %1454 = vmatprep.mubr.msk.f32.mxu1 %vm1655_vm0, %v1654_v53 }
  0x87   : > { %1487 = vmatpush3.msra.mxu0 %v1939_v2  ;;  %1455 = vmatmul.mubr.f32.gmra.mxu1 %v1170_v28 }
  0x88   : > { %1557 = vmatprep.subr.mxu1 %v1654_v53  ;;  %1488 = vmatprep.subr.mxu0 %v1654_v53 }
  0x89   : > { %1558 = vmatpush3.msra.mxu1 %v1939_v2  ;;  %1386 = vmatprep.mubr.msk.f32.mxu0 %vm1655_vm0, %v1654_v53 }
  0x8a   : > { %1489 = vmatpush3.msra.mxu0 %v1948_v3  ;;  %1457 = vmatprep.mubr.msk.f32.mxu1 %vm1655_vm0, %v1654_v53 }
  0x8b   : > { %1387 = vmatmul.mubr.f32.gmra.mxu0 %v441_v29  ;;  %1559 = vmatprep.subr.mxu1 %v1654_v53 }
  0x8c   : > { %1458 = vmatmul.mubr.f32.gmra.mxu1 %v1171_v30  ;;  %1490 = vmatprep.subr.mxu0 %v1654_v53 }
  0x8d   : > { %1560 = vmatpush3.msra.mxu1 %v1948_v3  ;;  %1491 = vmatpush3.msra.mxu0 %v1957_v4 }
  0x8e   : > { %1492 = vmatprep.mubr.msk.f32.mxu0 %vm1655_vm0, %v1654_v53  ;;  %1561 = vmatprep.subr.mxu1 %v1654_v53 }
  0x8f   : > { %1493 = vmatmul.mubr.f32.vlgmr.msra.gmra.mxu0 %v1172_v31  ;;  %1562 = vmatpush3.msra.mxu1 %v1957_v4 }
  0x90   : > { %1563 = vmatprep.mubr.msk.f32.mxu1 %vm1655_vm0, %v1654_v53  ;;  %1495 = vmatprep.mubr.msk.f32.mxu0 %vm1655_vm0, %v1654_v53 }
  0x91   : > { %1564 = vmatmul.mubr.f32.vlgmr.msra.gmra.mxu1 %v1185_v32 }
  0x92   : > { %1566 = vmatprep.mubr.msk.f32.mxu1 %vm1655_vm0, %v1654_v53 }
  0x93   : > { %1496 = vmatmul.mubr.f32.gmra.mxu0 %v1173_v33 }
  0x94   : > { %1498 = vmatprep.mubr.msk.f32.mxu0 %vm1655_vm0, %v1654_v53 }
  0x95   : > { %1567 = vmatmul.mubr.f32.gmra.mxu1 %v1186_v34 }
  0x96   : > { %1569 = vmatprep.mubr.msk.f32.mxu1 %vm1655_vm0, %v1654_v53 }
  0x97   : > { %1499 = vmatmul.mubr.f32.gmra.mxu0 %v1174_v35 }
  0x98   : > { %1501 = vmatprep.mubr.msk.f32.mxu0 %vm1655_vm0, %v1654_v53 }
  0x99   : > { %1570 = vmatmul.mubr.f32.gmra.mxu1 %v1187_v36 }
  0x9a   : > { %1572 = vmatprep.mubr.msk.f32.mxu1 %vm1655_vm0, %v1654_v53 }
  0x9b   : > { %1502 = vmatmul.mubr.f32.gmra.mxu0 %v1175_v37 }
  0x9c   : > { %1504 = vmatprep.mubr.msk.f32.mxu0 %vm1655_vm0, %v1654_v53 }
  0x9d   : > { %1573 = vmatmul.mubr.f32.gmra.mxu1 %v1188_v38 }
  0x9e   : > { %1575 = vmatprep.mubr.msk.f32.mxu1 %vm1655_vm0, %v1654_v53 }
  0x9f   : > { %1505 = vmatmul.mubr.f32.gmra.mxu0 %v1176_v39 }
  0xa0   : > { %1507 = vmatprep.mubr.msk.f32.mxu0 %vm1655_vm0, %v1654_v53 }
  0xa1   : > { %1576 = vmatmul.mubr.f32.gmra.mxu1 %v1189_v40 }
  0xa2   : > { %1578 = vmatprep.mubr.msk.f32.mxu1 %vm1655_vm0, %v1654_v53 }
  0xa3   : > { %1508 = vmatmul.mubr.f32.gmra.mxu0 %v1177_v41 }
  0xa4   : > { %1510 = vmatprep.mubr.msk.f32.mxu0 %vm1655_vm0, %v1654_v53 }
  0xa5   : > { %1579 = vmatmul.mubr.f32.gmra.mxu1 %v1190_v42 }
  0xa6   : > { %1581 = vmatprep.mubr.msk.f32.mxu1 %vm1655_vm0, %v1654_v53 }
  0xa7   : > { %1511 = vmatmul.mubr.f32.gmra.mxu0 %v1178_v43 }
  0xa8   : > { %1513 = vmatprep.mubr.msk.f32.mxu0 %vm1655_vm0, %v1654_v53 }
  0xa9   : > { %1582 = vmatmul.mubr.f32.gmra.mxu1 %v1191_v44 }
  0xaa   : > { %1584 = vmatprep.mubr.msk.f32.mxu1 %vm1655_vm0, %v1654_v53 }
  0xab   : > { %1514 = vmatmul.mubr.f32.gmra.mxu0 %v1179_v45 }
  0xac   : > { %1516 = vmatprep.mubr.msk.f32.mxu0 %vm1655_vm0, %v1654_v53 }
  0xad   : > { %1585 = vmatmul.mubr.f32.gmra.mxu1 %v1192_v46 }
  0xae   : > { %1587 = vmatprep.mubr.msk.f32.mxu1 %vm1655_vm0, %v1654_v53 }
  0xaf   : > { %1517 = vmatmul.mubr.f32.gmra.mxu0 %v1180_v47 }
  0xb0   : > { %1519 = vmatprep.mubr.msk.f32.mxu0 %vm1655_vm0, %v1654_v53 }
  0xb1   : > { %1588 = vmatmul.mubr.f32.gmra.mxu1 %v1193_v48 }
  0xb2   : > { %1590 = vmatprep.mubr.msk.f32.mxu1 %vm1655_vm0, %v1654_v53 }
  0xb3   : > { %1520 = vmatmul.mubr.f32.gmra.mxu0 %v1181_v49  ;;  %v2240_v49 = vld [vmem:[%s2322_s2] ss:$0 sm:$0xff] }
  0xb4   : > { %1522 = vmatprep.mubr.msk.f32.mxu0 %vm1655_vm0, %v1654_v53 }
  0xb5   : > { %1591 = vmatmul.mubr.f32.gmra.mxu1 %v1194_v50 }
  0xb6   : > { %1593 = vmatprep.mubr.msk.f32.mxu1 %vm1655_vm0, %v1654_v53 }
  0xb7   : > { %1523 = vmatmul.mubr.f32.gmra.mxu0 %v1182_v51 }
  0xb8   : > { %1525 = vmatprep.mubr.msk.f32.mxu0 %vm1655_vm0, %v1654_v53 }
  0xb9   : > { %1594 = vmatmul.mubr.f32.gmra.mxu1 %v1195_v52 }
  0xba   : > { %1596 = vmatprep.mubr.msk.f32.mxu1 %vm1655_vm0, %v1654_v53 }
  0xbb   : > { %1526 = vmatmul.mubr.f32.gmra.mxu0 %v1183_v54 }
  0xbc   : > { %1528 = vmatprep.mubr.msk.f32.mxu0 %vm1655_vm0, %v1654_v53 }
  0xbd   : > { %1597 = vmatmul.mubr.f32.gmra.mxu1 %v1196_v55 }
  0xbe   : > { %1599 = vmatprep.mubr.msk.f32.mxu1 %vm1655_vm0, %v1654_v53 }
  0xbf   : > { %1529 = vmatmul.mubr.f32.gmra.mxu0 %v1184_v56 }
  0xc1   : > { %1600 = vmatmul.mubr.f32.gmra.mxu1 %v1197_v57 }
 0x115   : > { %v508_v58 = vpop.f32.mrf.mxu0 }
 0x117   : > { %v652_v59 = vpop.f32.mrf.mxu1  ;;  %v1352_v60 = vpop.f32.mrf.mxu0 }
 0x118   : > { %v716_v44 = vmax.f32 %v508_v58, %v652_v59 }
 0x119   : > { %v1423_v61 = vpop.f32.mrf.mxu1  ;;  %v2187_v62 = vpop.f32.mrf.mxu0 }
 0x11b   : > { %v2189_v63 = vpop.f32.mrf.mxu1  ;;  %v1355_v0 = vpop.f32.mrf.mxu0 }
 0x11c   : > { %v717_v51 = vmax.f32 %v2187_v62, %v2189_v63 }
 0x11d   : > { %v1426_v1 = vpop.f32.mrf.mxu1 }
 0x11e   : > { %v2191_v2 = vpop.f32.mrf.mxu0 }
 0x11f   : > { %v2193_v3 = vpop.f32.mrf.mxu1 }
 0x120   : > { %v1358_v4 = vpop.f32.mrf.mxu0  ;;  %v718_v60 = vmax.f32 %v2191_v2, %v2193_v3 }
 0x121   : > { %v1429_v5 = vpop.f32.mrf.mxu1 }
 0x123   : > { %v2195_v53 = vpop.f32.mrf.mxu0 }
 0x124   : > { %v2197_v6 = vpop.f32.mrf.mxu1 }
 0x125   : > { %v1361_v7 = vpop.f32.mrf.mxu0 }
 0x126   : > { %v1432_v8 = vpop.f32.mrf.mxu1 }
 0x127   : > { %v2199_v9 = vpop.f32.mrf.mxu0  ;;  %v719_v8 = vmax.f32 %v2195_v53, %v2197_v6 }
 0x129   : > { %v2201_v10 = vpop.f32.mrf.mxu1  ;;  %v1364_v11 = vpop.f32.mrf.mxu0 }
 0x12b   : > { %v1435_v12 = vpop.f32.mrf.mxu1  ;;  %v2203_v13 = vpop.f32.mrf.mxu0 }
 0x12d   : > { %v2205_v14 = vpop.f32.mrf.mxu1  ;;  %v1367_v15 = vpop.f32.mrf.mxu0 }
 0x12f   : > { %v1438_v16 = vpop.f32.mrf.mxu1 }
 0x130   : > { %v2207_v17 = vpop.f32.mrf.mxu0 }
 0x131   : > { %v2209_v18 = vpop.f32.mrf.mxu1 }
 0x132   : > { %v1370_v19 = vpop.f32.mrf.mxu0 }
 0x133   : > { %v1441_v20 = vpop.f32.mrf.mxu1 }
 0x135   : > { %v2211_v21 = vpop.f32.mrf.mxu0 }
 0x136   : > { %v2213_v22 = vpop.f32.mrf.mxu1 }
 0x137   : > { %v1373_v23 = vpop.f32.mrf.mxu0 }
 0x138   : > { %v1444_v24 = vpop.f32.mrf.mxu1  ;;  %v720_v23 = vmax.f32 %v2199_v9, %v2201_v10 }
 0x139   : > { %v2215_v25 = vpop.f32.mrf.mxu0 }
 0x13a   : > { %v2217_v26 = vpop.f32.mrf.mxu1 }
 0x13b   : > { %v1376_v27 = vpop.f32.mrf.mxu0 }
 0x13c   : > { %v1447_v28 = vpop.f32.mrf.mxu1 }
 0x13d   : > { %v2219_v29 = vpop.f32.mrf.mxu0 }
 0x13f   : > { %v2221_v30 = vpop.f32.mrf.mxu1  ;;  %v1379_v31 = vpop.f32.mrf.mxu0 }
 0x141   : > { %v1450_v32 = vpop.f32.mrf.mxu1 }
 0x142   : > { %v2223_v33 = vpop.f32.mrf.mxu0 }
 0x143   : > { %v2225_v34 = vpop.f32.mrf.mxu1 }
 0x144   : > { %v1382_v35 = vpop.f32.mrf.mxu0 }
 0x145   : > { %v1453_v36 = vpop.f32.mrf.mxu1 }
 0x146   : > { %v2227_v37 = vpop.f32.mrf.mxu0  ;;  %v721_v36 = vmax.f32 %v2203_v13, %v2205_v14 }
 0x147   : > { %v2231_v38 = vpop.f32.mrf.mxu1 }
 0x148   : > { %v1385_v39 = vpop.f32.mrf.mxu0 }
 0x149   : > { %v1456_v40 = vpop.f32.mrf.mxu1 }
 0x14b   : > { %v2233_v41 = vpop.f32.mrf.mxu0 }
 0x14c   : > { %v2235_v42 = vpop.f32.mrf.mxu1 }
 0x14d   : > { %v1388_v43 = vpop.f32.mrf.mxu0 }
 0x14e   : > { %v1459_v45 = vpop.f32.mrf.mxu1 }
 0x14f   : > { %v809_v46 = vpop.f32.mrf.mxu0 }
 0x150   : > { %v873_v47 = vmax.f32 %v716_v44, %v809_v46 }
 0x151   : > { %v966_v48 = vpop.f32.mrf.mxu1  ;;  %v1494_v50 = vpop.f32.mrf.mxu0 }
 0x152   : > { %v1030_v52 = vmax.f32 %v873_v47, %v966_v48  ;;  %v722_v47 = vmax.f32 %v2207_v17, %v2209_v18 }
 0x153   : > { %v1565_v54 = vpop.f32.mrf.mxu1  ;;  %v814_v55 = vpop.f32.mrf.mxu0 }
 0x154   : > { %v1050_v56 = vadd.f32 %v2240_v49, %v1030_v52  ;;  %v874_v57 = vmax.f32 %v717_v51, %v814_v55 }
 0x155   : > { %v971_v58 = vpop.f32.mrf.mxu1  ;;  %v1497_v59 = vpop.f32.mrf.mxu0 }
 0x156   : > { %v1063_v61 = vmax.f32 %v1050_v56, 0.0  ;;  %v1031_v62 = vmax.f32 %v874_v57, %v971_v58  ;;  %v723_v56 = vmax.f32 %v2211_v21, %v2213_v22 }
 0x157   : > { %v1568_v63 = vpop.f32.mrf.mxu1  ;;  %v819_v0 = vpop.f32.mrf.mxu0 }
 0x158   : > { %1077 = vst.msk [vmem:[%s2248_s23] sm:$0xff] %vm1076_vm1, %v1063_v61  ;;  %v1051_v1 = vadd.f32 %v2240_v49, %v1031_v62  ;;  %v875_v4 = vmax.f32 %v718_v60, %v819_v0  ;;  %v724_v63 = vmax.f32 %v2215_v25, %v2217_v26 }
 0x159   : > { %v976_v5 = vpop.f32.mrf.mxu1  ;;  %v1500_v7 = vpop.f32.mrf.mxu0 }
 0x15a   : > { %v1064_v11 = vmax.f32 %v1051_v1, 0.0  ;;  %v1032_v12 = vmax.f32 %v875_v4, %v976_v5 }
 0x15b   : > { %v1571_v15 = vpop.f32.mrf.mxu1  ;;  %v824_v16 = vpop.f32.mrf.mxu0 }
 0x15c   : > { %1078 = vst.msk [vmem:[%s2248_s23 + $0x8] sm:$0xff] %vm1076_vm1, %v1064_v11  ;;  %v1052_v2 = vadd.f32 %v2240_v49, %v1032_v12  ;;  %v876_v3 = vmax.f32 %v719_v8, %v824_v16  ;;  %v725_v11 = vmax.f32 %v2219_v29, %v2221_v30 }
 0x15d   : > { %v981_v19 = vpop.f32.mrf.mxu1  ;;  %v1503_v20 = vpop.f32.mrf.mxu0 }
 0x15e   : > { %v1065_v24 = vmax.f32 %v1052_v2, 0.0  ;;  %v1033_v27 = vmax.f32 %v876_v3, %v981_v19  ;;  %v726_v20 = vmax.f32 %v2223_v33, %v2225_v34 }
 0x15f   : > { %v1574_v28 = vpop.f32.mrf.mxu1  ;;  %v829_v31 = vpop.f32.mrf.mxu0 }
 0x160   : > { %1079 = vst.msk [vmem:[%s2248_s23 + $0x10] sm:$0xff] %vm1076_vm1, %v1065_v24  ;;  %v1053_v53 = vadd.f32 %v2240_v49, %v1033_v27  ;;  %v877_v6 = vmax.f32 %v720_v23, %v829_v31 }
 0x161   : > { %v986_v32 = vpop.f32.mrf.mxu1  ;;  %v1506_v35 = vpop.f32.mrf.mxu0 }
 0x162   : > { %v1066_v39 = vmax.f32 %v1053_v53, 0.0  ;;  %v1034_v40 = vmax.f32 %v877_v6, %v986_v32  ;;  %v727_v6 = vmax.f32 %v2227_v37, %v2231_v38 }
 0x163   : > { %v1577_v43 = vpop.f32.mrf.mxu1  ;;  %v834_v44 = vpop.f32.mrf.mxu0 }
 0x164   : > { %1080 = vst.msk [vmem:[%s2248_s23 + $0x18] sm:$0xff] %vm1076_vm1, %v1066_v39  ;;  %v1054_v9 = vadd.f32 %v2240_v49, %v1034_v40  ;;  %v878_v10 = vmax.f32 %v721_v36, %v834_v44  ;;  %v728_v44 = vmax.f32 %v2233_v41, %v2235_v42 }
 0x165   : > { %v991_v45 = vpop.f32.mrf.mxu1  ;;  %v1509_v46 = vpop.f32.mrf.mxu0 }
 0x166   : > { %v1067_v48 = vmax.f32 %v1054_v9, 0.0  ;;  %v1035_v50 = vmax.f32 %v878_v10, %v991_v45 }
 0x167   : > { %v1580_v51 = vpop.f32.mrf.mxu1  ;;  %v839_v52 = vpop.f32.mrf.mxu0 }
 0x168   : > { %1081 = vst.msk [vmem:[%s2248_s23 + $0x20] sm:$0xff] %vm1076_vm1, %v1067_v48  ;;  %v1055_v13 = vadd.f32 %v2240_v49, %v1035_v50  ;;  %v879_v14 = vmax.f32 %v722_v47, %v839_v52 }
 0x169   : > { %v996_v54 = vpop.f32.mrf.mxu1  ;;  %v1512_v55 = vpop.f32.mrf.mxu0 }
 0x16a   : > { %v1068_v57 = vmax.f32 %v1055_v13, 0.0  ;;  %v1036_v58 = vmax.f32 %v879_v14, %v996_v54 }
 0x16b   : > { %v1583_v59 = vpop.f32.mrf.mxu1  ;;  %v844_v60 = vpop.f32.mrf.mxu0 }
 0x16c   : > { %1082 = vst.msk [vmem:[%s2248_s23 + $0x28] sm:$0xff] %vm1076_vm1, %v1068_v57  ;;  %v1056_v17 = vadd.f32 %v2240_v49, %v1036_v58  ;;  %v880_v18 = vmax.f32 %v723_v56, %v844_v60 }
 0x16d   : > { %v1001_v61 = vpop.f32.mrf.mxu1  ;;  %v1515_v62 = vpop.f32.mrf.mxu0 }
 0x16e   : > { %v1069_v0 = vmax.f32 %v1056_v17, 0.0  ;;  %v1037_v1 = vmax.f32 %v880_v18, %v1001_v61 }
 0x16f   : > { %v1586_v4 = vpop.f32.mrf.mxu1  ;;  %v849_v5 = vpop.f32.mrf.mxu0 }
 0x170   : > { %1083 = vst.msk [vmem:[%s2248_s23 + $0x30] sm:$0xff] %vm1076_vm1, %v1069_v0  ;;  %v1057_v21 = vadd.f32 %v2240_v49, %v1037_v1  ;;  %v881_v22 = vmax.f32 %v724_v63, %v849_v5 }
 0x171   : > { %v1006_v7 = vpop.f32.mrf.mxu1  ;;  %v1518_v8 = vpop.f32.mrf.mxu0 }
 0x172   : > { %v1070_v12 = vmax.f32 %v1057_v21, 0.0  ;;  %v1038_v15 = vmax.f32 %v881_v22, %v1006_v7 }
 0x173   : > { %v1589_v16 = vpop.f32.mrf.mxu1  ;;  %v854_v2 = vpop.f32.mrf.mxu0 }
 0x174   : > { %1084 = vst.msk [vmem:[%s2248_s23 + $0x38] sm:$0xff] %vm1076_vm1, %v1070_v12  ;;  %v1058_v25 = vadd.f32 %v2240_v49, %v1038_v15  ;;  %v882_v26 = vmax.f32 %v725_v11, %v854_v2 }
 0x175   : > { %v1011_v3 = vpop.f32.mrf.mxu1  ;;  %v1521_v19 = vpop.f32.mrf.mxu0 }
 0x176   : > { %v1071_v23 = vmax.f32 %v1058_v25, 0.0  ;;  %v1039_v24 = vmax.f32 %v882_v26, %v1011_v3 }
 0x177   : > { %v1592_v27 = vpop.f32.mrf.mxu1  ;;  %v859_v28 = vpop.f32.mrf.mxu0 }
 0x178   : > { %1085 = vst.msk [vmem:[%s2248_s23 + $0x40] sm:$0xff] %vm1076_vm1, %v1071_v23  ;;  %v1059_v29 = vadd.f32 %v2240_v49, %v1039_v24  ;;  %v883_v30 = vmax.f32 %v726_v20, %v859_v28 }
 0x179   : > { %v1016_v31 = vpop.f32.mrf.mxu1  ;;  %v1524_v53 = vpop.f32.mrf.mxu0 }
 0x17a   : > { %v1072_v32 = vmax.f32 %v1059_v29, 0.0  ;;  %v1040_v35 = vmax.f32 %v883_v30, %v1016_v31 }
 0x17b   : > { %v1595_v36 = vpop.f32.mrf.mxu1  ;;  %v864_v39 = vpop.f32.mrf.mxu0 }
 0x17c   : > { %1086 = vst.msk [vmem:[%s2248_s23 + $0x48] sm:$0xff] %vm1076_vm1, %v1072_v32  ;;  %v1060_v33 = vadd.f32 %v2240_v49, %v1040_v35  ;;  %v884_v34 = vmax.f32 %v727_v6, %v864_v39 }
 0x17d   : > { %v1021_v40 = vpop.f32.mrf.mxu1  ;;  %v1527_v43 = vpop.f32.mrf.mxu0 }
 0x17e   : > { %v1073_v9 = vmax.f32 %v1060_v33, 0.0  ;;  %v1041_v10 = vmax.f32 %v884_v34, %v1021_v40 }
 0x17f   : > { %v1598_v45 = vpop.f32.mrf.mxu1  ;;  %v869_v37 = vpop.f32.mrf.mxu0 }
 0x180   : > { %1087 = vst.msk [vmem:[%s2248_s23 + $0x50] sm:$0xff] %vm1076_vm1, %v1073_v9  ;;  %v1061_v38 = vadd.f32 %v2240_v49, %v1041_v10  ;;  %v885_v46 = vmax.f32 %v728_v44, %v869_v37 }
 0x181   : > { %v1026_v47 = vpop.f32.mrf.mxu1  ;;  %v1530_v48 = vpop.f32.mrf.mxu0 }
 0x182   : > { %v1074_v50 = vmax.f32 %v1061_v38, 0.0  ;;  %v1042_v51 = vmax.f32 %v885_v46, %v1026_v47 }
 0x183   : > { %v1601_v52 = vpop.f32.mrf.mxu1 }
 0x184   : > { %1088 = vst.msk [vmem:[%s2248_s23 + $0x58] sm:$0xff] %vm1076_vm1, %v1074_v50  ;;  %v1062_v13 = vadd.f32 %v2240_v49, %v1042_v51 }
 0x186   : > { %v1075_v41 = vmax.f32 %v1062_v13, 0.0 }
 0x188   : > { %1089 = vst.msk [vmem:[%s2248_s23 + $0x60] sm:$0xff] %vm1076_vm1, %v1075_v41 }
 0x189 PF: > { %p10_p9 = scmp.ge.s32.totalorder %s1693_s16, 6   ;;  %s2324_s12 = smov %s1648_s13 }
 0x18a   : > { %s2325_s13 = smov %s1702_s19  ;;  %s2326_s14 = smov %s1693_s16 }
 0x18b   :  { %12 = sbr.rel (!%p10_p9) target bundleno = 2 (0x2), region = 108 }

// kernel: cnn_forward.4
= control target key start
LH: loop header
LB: loop body
LE: loop exit
PB: predicated region body
PF: predicated region fallthrough
CT: control target
= control target key end

     0   :  { %s906_s12 = smov 0   ;;  %s908_s13 = smov 0   ;;  %s1285_s0 = inlined_call_operand.vmem [shape: f32[4,64,256], index: 0, kind: input, shape index: {}]   ;;  %s1286_s1 = inlined_call_operand.vmem [shape: f32[256,128], index: 1, kind: input, shape index: {}]   ;;  %s1287_s2 = inlined_call_operand.vmem [shape: f32[1,16], index: 2, kind: input, shape index: {}]   ;;  %s1288_s3 = inlined_call_operand.vmem [shape: f32[64,16], index: 3, kind: output, shape index: {}]  }
   0x1   :  { %s910_s14 = smov 0  }
   0x2 LB: > { %s657_s15 = sadd.s32 4294967295, %s884_s14   ;;  %s923_s16 = sadd.s32 1, %s884_s14   ;;  %s884_s14 = sphi %s910_s14, %s1291_s14   ;;  %s880_s13 = sphi %s908_s13, %s1290_s13   ;;  %s876_s12 = sphi %s906_s12, %s1289_s12  }
   0x3   : > { %s17_s17 = ssub.s32 %s884_s14, %s923_s16  ;;  %s20_s18 = sadd.s32 1, %s880_s13 }
   0x4   : > { %p18_p0 = scmp.eq.s32.totalorder %s17_s17, 0  ;;  %p27_p1 = scmp.ne.s32.totalorder %s880_s13, %s876_s12 }
   0x5   : > { %p28_p2 = scmp.eq.s32.totalorder %s884_s14, 0  ;;  %p660_p4 = scmp.ge.s32.totalorder %s884_s14, 4 }
   0x6   : > { %s932_s19 = scalar_select %p18_p0, %s880_s13, %s20_s18  }
   0x7   : > { %p29_p3 = por %p28_p2, %p27_p1  ;;  %127 = sbr.rel (%p660_p4) target bundleno = 24 (0x18), region = 24 }
   0xc   : > { %130 = sbr.rel (!%p29_p3) target bundleno = 24 (0x18), region = 28  ;;  %s132_s20 = sand.u32 (%p29_p3), 1, %s880_s13  }
   0xd   : > { %s685_s21 = sshll.u32 (%p29_p3), %s884_s14, 5  ;;  %s661_s22 = sshll.u32 (%p29_p3), %s132_s20, 7 }
   0xe   : > { %s940_s25 = scalar_lea.vmem (%p29_p3), %s1285_s0, %s685_s21  ;;  %s134_s26 = scalar_lea.vmem (%p29_p3), [#allocation2], %s661_s22 }
   0xf   : > { %v151_v0 = vld [vmem:[%s940_s25] sm:$0xff] (%p29_p3)  ;;  %v153_v1 = vld [vmem:[%s940_s25 + $0x8] sm:$0xff] (%p29_p3)  ;;  %v155_v2 = vld [vmem:[%s940_s25 + $0x10] sm:$0xff] (%p29_p3) }
  0x10   : > { %152 = vst [vmem:[%s134_s26] sm:$0xff] (%p29_p3), %v151_v0  ;;  %154 = vst [vmem:[%s134_s26 + $0x8] sm:$0xff] (%p29_p3), %v153_v1  ;;  %v157_v3 = vld [vmem:[%s940_s25 + $0x18] sm:$0xff] (%p29_p3)  ;;  %v159_v4 = vld [vmem:[%s940_s25 + $0x80] sm:$0xff] (%p29_p3) }
  0x11   : > { %156 = vst [vmem:[%s134_s26 + $0x10] sm:$0xff] %v155_v2  ;;  %v161_v5 = vld [vmem:[%s940_s25 + $0x88] sm:$0xff]  ;;  %158 = vst [vmem:[%s134_s26 + $0x18] sm:$0xff] %v157_v3  ;;  %v163_v6 = vld [vmem:[%s940_s25 + $0x90] sm:$0xff] }
  0x12   : > { %160 = vst [vmem:[%s134_s26 + $0x20] sm:$0xff] %v159_v4  ;;  %162 = vst [vmem:[%s134_s26 + $0x28] sm:$0xff] %v161_v5  ;;  %v165_v7 = vld [vmem:[%s940_s25 + $0x98] sm:$0xff]  ;;  %v167_v8 = vld [vmem:[%s940_s25 + $0x100] sm:$0xff] }
  0x13   : > { %164 = vst [vmem:[%s134_s26 + $0x30] sm:$0xff] %v163_v6  ;;  %166 = vst [vmem:[%s134_s26 + $0x38] sm:$0xff] %v165_v7  ;;  %v169_v9 = vld [vmem:[%s940_s25 + $0x108] sm:$0xff]  ;;  %v171_v10 = vld [vmem:[%s940_s25 + $0x110] sm:$0xff] }
  0x14   : > { %168 = vst [vmem:[%s134_s26 + $0x40] sm:$0xff] %v167_v8  ;;  %v173_v11 = vld [vmem:[%s940_s25 + $0x118] sm:$0xff]  ;;  %170 = vst [vmem:[%s134_s26 + $0x48] sm:$0xff] %v169_v9  ;;  %v175_v12 = vld [vmem:[%s940_s25 + $0x180] sm:$0xff] }
  0x15   : > { %172 = vst [vmem:[%s134_s26 + $0x50] sm:$0xff] %v171_v10  ;;  %174 = vst [vmem:[%s134_s26 + $0x58] sm:$0xff] %v173_v11  ;;  %v177_v13 = vld [vmem:[%s940_s25 + $0x188] sm:$0xff]  ;;  %v179_v14 = vld [vmem:[%s940_s25 + $0x190] sm:$0xff] }
  0x16   : > { %176 = vst [vmem:[%s134_s26 + $0x60] sm:$0xff] %v175_v12  ;;  %178 = vst [vmem:[%s134_s26 + $0x68] sm:$0xff] %v177_v13  ;;  %v181_v15 = vld [vmem:[%s940_s25 + $0x198] sm:$0xff] }
  0x17   : > { %180 = vst [vmem:[%s134_s26 + $0x70] sm:$0xff] %v179_v14  ;;  %182 = vst [vmem:[%s134_s26 + $0x78] sm:$0xff] %v181_v15 }
  0x18 PF: > { %p665_p5 = scmp.ge.s32.totalorder %s884_s14, 1  ;;  %p187_p6 = scmp.lt.s32.totalorder %s884_s14, 5 }
  0x1a   : > { %p188_p7 = pnand %p665_p5, %p187_p6 }
  0x1b   : > { %s194_s4 = sand.u32 (!%p188_p7), 1, %s876_s12   ;;  %s667_s30 = sshll.u32 (!%p188_p7), %s657_s15, 1 }
  0x1c   : > { %191 = sbr.rel (%p188_p7) target bundleno = 313 (0x139), region = 51  ;;  %s666_s10 = sshll.u32 (!%p188_p7), %s194_s4, 7 }
  0x1d   : > { %s1179_s29 = scalar_lea.vmem (!%p188_p7), [#allocation2], %s666_s10  ;;  %p219_p8 = scmp.lt.s32.totalorder (!%p188_p7), %s667_s30, 7 }
  0x21   : > { %v963_v16 = vld [vmem:[%s1286_s1 + $0xf8] sm:$0xff]  ;;  %v973_v18 = vld [vmem:[%s1286_s1 + $0xf0] sm:$0xff]  ;;  %v987_v20 = vld [vmem:[%s1286_s1 + $0xe8] sm:$0xff]  ;;  %s1293_s30 = smov (!%p219_p8, %s667_s30), 7  ;;  %vm592_vm0 = vcmask 130048  }
  0x22   : > { %v968_v17 = vld [vmem:[%s1286_s1 + $0x78] sm:$0xff]  ;;  %686 = vmatprep.subr.mxu0 %v963_v16  ;;  %724 = vmatprep.subr.mxu1 %v963_v16  ;;  %v980_v19 = vld [vmem:[%s1286_s1 + $0x70] sm:$0xff]  ;;  %v994_v21 = vld [vmem:[%s1286_s1 + $0x68] sm:$0xff]  ;;  %s668_s4 = sshll.u32 %s1293_s30, 3 }
  0x23   : > { %687 = vmatpush3.msra.mxu0 %v968_v17  ;;  %725 = vmatpush3.msra.mxu1 %v968_v17  ;;  %v1001_v22 = vld [vmem:[%s1286_s1 + $0xe0] sm:$0xff]  ;;  %v1015_v24 = vld [vmem:[%s1286_s1 + $0xd8] sm:$0xff]  ;;  %v1029_v26 = vld [vmem:[%s1286_s1 + $0xd0] sm:$0xff]  ;;  %s222_s7 = scalar_lea.vmem %s1288_s3, %s668_s4 }
  0x24   : > { %688 = vmatprep.subr.mxu0 %v973_v18  ;;  %726 = vmatprep.subr.mxu1 %v973_v18  ;;  %v1008_v23 = vld [vmem:[%s1286_s1 + $0x60] sm:$0xff]  ;;  %v1022_v25 = vld [vmem:[%s1286_s1 + $0x58] sm:$0xff]  ;;  %v1036_v27 = vld [vmem:[%s1286_s1 + $0x50] sm:$0xff] }
  0x25   : > { %689 = vmatpush3.msra.mxu0 %v980_v19  ;;  %727 = vmatpush3.msra.mxu1 %v980_v19  ;;  %v1043_v28 = vld [vmem:[%s1286_s1 + $0xc8] sm:$0xff]  ;;  %v1057_v30 = vld [vmem:[%s1286_s1 + $0xc0] sm:$0xff]  ;;  %v1071_v32 = vld [vmem:[%s1286_s1 + $0xb8] sm:$0xff] }
  0x26   : > { %690 = vmatprep.subr.mxu0 %v987_v20  ;;  %728 = vmatprep.subr.mxu1 %v987_v20  ;;  %v1050_v29 = vld [vmem:[%s1286_s1 + $0x48] sm:$0xff]  ;;  %v1064_v31 = vld [vmem:[%s1286_s1 + $0x40] sm:$0xff]  ;;  %v1078_v33 = vld [vmem:[%s1286_s1 + $0x38] sm:$0xff] }
  0x27   : > { %691 = vmatpush3.msra.mxu0 %v994_v21  ;;  %729 = vmatpush3.msra.mxu1 %v994_v21  ;;  %v1085_v34 = vld [vmem:[%s1286_s1 + $0xb0] sm:$0xff]  ;;  %v1099_v36 = vld [vmem:[%s1286_s1 + $0xa8] sm:$0xff]  ;;  %v1113_v38 = vld [vmem:[%s1286_s1 + $0xa0] sm:$0xff] }
  0x28   : > { %692 = vmatprep.subr.mxu0 %v1001_v22  ;;  %730 = vmatprep.subr.mxu1 %v1001_v22  ;;  %v1092_v35 = vld [vmem:[%s1286_s1 + $0x30] sm:$0xff]  ;;  %v1106_v37 = vld [vmem:[%s1286_s1 + $0x28] sm:$0xff]  ;;  %v1121_v39 = vld [vmem:[%s1286_s1 + $0x20] sm:$0xff] }
  0x29   : > { %693 = vmatpush3.msra.mxu0 %v1008_v23  ;;  %731 = vmatpush3.msra.mxu1 %v1008_v23  ;;  %v1128_v40 = vld [vmem:[%s1286_s1 + $0x98] sm:$0xff]  ;;  %v1142_v42 = vld [vmem:[%s1286_s1 + $0x90] sm:$0xff]  ;;  %v1156_v44 = vld [vmem:[%s1286_s1 + $0x88] sm:$0xff] }
  0x2a   : > { %694 = vmatprep.subr.mxu0 %v1015_v24  ;;  %732 = vmatprep.subr.mxu1 %v1015_v24  ;;  %v1135_v41 = vld [vmem:[%s1286_s1 + $0x18] sm:$0xff]  ;;  %v1149_v43 = vld [vmem:[%s1286_s1 + $0x10] sm:$0xff]  ;;  %v1163_v45 = vld [vmem:[%s1286_s1 + $0x8] sm:$0xff] }
  0x2b   : > { %695 = vmatpush3.msra.mxu0 %v1022_v25  ;;  %733 = vmatpush3.msra.mxu1 %v1022_v25  ;;  %v1170_v46 = vld [vmem:[%s1286_s1 + $0x80] sm:$0xff]  ;;  %v257_v48 = vld [vmem:[%s1179_s29 + $0x8] sm:$0xff]  ;;  %v259_v52 = vld [vmem:[%s1179_s29 + $0x18] sm:$0xff] }
  0x2c   : > { %696 = vmatprep.subr.mxu0 %v1029_v26  ;;  %734 = vmatprep.subr.mxu1 %v1029_v26  ;;  %v1177_v47 = vld [vmem:[%s1286_s1] sm:$0xff]  ;;  %v670_v49 = vld [vmem:[%s1179_s29 + $0x28] sm:$0xff]  ;;  %v672_v53 = vld [vmem:[%s1179_s29 + $0x38] sm:$0xff] }
  0x2d   : > { %697 = vmatpush3.msra.mxu0 %v1036_v27  ;;  %735 = vmatpush3.msra.mxu1 %v1036_v27  ;;  %v256_v50 = vld [vmem:[%s1179_s29] sm:$0xff]  ;;  %v258_v54 = vld [vmem:[%s1179_s29 + $0x10] sm:$0xff]  ;;  %v674_v56 = vld [vmem:[%s1179_s29 + $0x48] sm:$0xff] }
  0x2e   : > { %698 = vmatprep.subr.mxu0 %v1043_v28  ;;  %736 = vmatprep.subr.mxu1 %v1043_v28  ;;  %v669_v51 = vld [vmem:[%s1179_s29 + $0x20] sm:$0xff]  ;;  %v671_v55 = vld [vmem:[%s1179_s29 + $0x30] sm:$0xff]  ;;  %v678_v57 = vld [vmem:[%s1179_s29 + $0x68] sm:$0xff] }
  0x2f   : > { %699 = vmatpush3.msra.mxu0 %v1050_v29  ;;  %737 = vmatpush3.msra.mxu1 %v1050_v29  ;;  %v673_v58 = vld [vmem:[%s1179_s29 + $0x40] sm:$0xff]  ;;  %v676_v60 = vld [vmem:[%s1179_s29 + $0x58] sm:$0xff]  ;;  %v675_v62 = vld [vmem:[%s1179_s29 + $0x50] sm:$0xff] }
  0x30   : > { %700 = vmatprep.subr.mxu0 %v1057_v30  ;;  %738 = vmatprep.subr.mxu1 %v1057_v30  ;;  %v677_v59 = vld [vmem:[%s1179_s29 + $0x60] sm:$0xff]  ;;  %v680_v61 = vld [vmem:[%s1179_s29 + $0x78] sm:$0xff]  ;;  %v679_v63 = vld [vmem:[%s1179_s29 + $0x70] sm:$0xff] }
  0x31   : > { %701 = vmatpush3.msra.mxu0 %v1064_v31  ;;  %739 = vmatpush3.msra.mxu1 %v1064_v31 }
  0x32   : > { %702 = vmatprep.subr.mxu0 %v1071_v32  ;;  %740 = vmatprep.subr.mxu1 %v1071_v32 }
  0x33   : > { %703 = vmatpush3.msra.mxu0 %v1078_v33  ;;  %741 = vmatpush3.msra.mxu1 %v1078_v33 }
  0x34   : > { %704 = vmatprep.subr.mxu0 %v1085_v34  ;;  %742 = vmatprep.subr.mxu1 %v1085_v34 }
  0x35   : > { %705 = vmatpush3.msra.mxu0 %v1092_v35  ;;  %743 = vmatpush3.msra.mxu1 %v1092_v35 }
  0x36   : > { %706 = vmatprep.subr.mxu0 %v1099_v36  ;;  %744 = vmatprep.subr.mxu1 %v1099_v36 }
  0x37   : > { %707 = vmatpush3.msra.mxu0 %v1106_v37  ;;  %745 = vmatpush3.msra.mxu1 %v1106_v37 }
  0x38   : > { %708 = vmatprep.subr.mxu0 %v1113_v38  ;;  %746 = vmatprep.subr.mxu1 %v1113_v38 }
  0x39   : > { %709 = vmatpush3.msra.mxu0 %v1121_v39  ;;  %747 = vmatpush3.msra.mxu1 %v1121_v39 }
  0x3a   : > { %710 = vmatprep.subr.mxu0 %v1128_v40  ;;  %748 = vmatprep.subr.mxu1 %v1128_v40 }
  0x3b   : > { %711 = vmatpush3.msra.mxu0 %v1135_v41  ;;  %749 = vmatpush3.msra.mxu1 %v1135_v41 }
  0x3c   : > { %712 = vmatprep.subr.mxu0 %v1142_v42  ;;  %750 = vmatprep.subr.mxu1 %v1142_v42 }
  0x3d   : > { %713 = vmatpush3.msra.mxu0 %v1149_v43  ;;  %751 = vmatpush3.msra.mxu1 %v1149_v43 }
  0x3e   : > { %714 = vmatprep.subr.mxu0 %v1156_v44  ;;  %752 = vmatprep.subr.mxu1 %v1156_v44 }
  0x3f   : > { %715 = vmatpush3.msra.mxu0 %v1163_v45  ;;  %753 = vmatpush3.msra.mxu1 %v1163_v45 }
  0x40   : > { %716 = vmatprep.subr.mxu0 %v1170_v46  ;;  %754 = vmatprep.subr.mxu1 %v1170_v46 }
  0x41   : > { %717 = vmatpush3.msra.mxu0 %v1177_v47  ;;  %324 = vmatprep.mubr.f32.mxu0 %v257_v48 }
  0x42   : > { %755 = vmatpush3.msra.mxu1 %v1177_v47  ;;  %404 = vmatprep.mubr.f32.mxu1 %v670_v49 }
  0x43   : > { %325 = vmatmul.mubr.f32.vlgmr.msra.gmra.mxu0 %v256_v50  ;;  %405 = vmatmul.mubr.f32.vlgmr.msra.gmra.mxu1 %v669_v51 }
  0x44   : > { %762 = vmatprep.subr.mxu0 %v963_v16  ;;  %800 = vmatprep.subr.mxu1 %v963_v16 }
  0x45   : > { %763 = vmatpush3.msra.mxu0 %v968_v17  ;;  %801 = vmatpush3.msra.mxu1 %v968_v17 }
  0x46   : > { %764 = vmatprep.subr.mxu0 %v973_v18  ;;  %802 = vmatprep.subr.mxu1 %v973_v18 }
  0x47   : > { %765 = vmatpush3.msra.mxu0 %v980_v19  ;;  %803 = vmatpush3.msra.mxu1 %v980_v19 }
  0x48   : > { %766 = vmatprep.subr.mxu0 %v987_v20  ;;  %804 = vmatprep.subr.mxu1 %v987_v20 }
  0x49   : > { %767 = vmatpush3.msra.mxu0 %v994_v21  ;;  %805 = vmatpush3.msra.mxu1 %v994_v21 }
  0x4a   : > { %768 = vmatprep.subr.mxu0 %v1001_v22  ;;  %806 = vmatprep.subr.mxu1 %v1001_v22  ;;  %v681_v22 = vld [vmem:[%s1287_s2] ss:$0 sm:$0xff] }
  0x4b   : > { %769 = vmatpush3.msra.mxu0 %v1008_v23  ;;  %807 = vmatpush3.msra.mxu1 %v1008_v23 }
  0x4c   : > { %770 = vmatprep.subr.mxu0 %v1015_v24  ;;  %808 = vmatprep.subr.mxu1 %v1015_v24 }
  0x4d   : > { %771 = vmatpush3.msra.mxu0 %v1022_v25  ;;  %809 = vmatpush3.msra.mxu1 %v1022_v25 }
  0x4e   : > { %772 = vmatprep.subr.mxu0 %v1029_v26  ;;  %810 = vmatprep.subr.mxu1 %v1029_v26 }
  0x4f   : > { %773 = vmatpush3.msra.mxu0 %v1036_v27  ;;  %811 = vmatpush3.msra.mxu1 %v1036_v27 }
  0x50   : > { %774 = vmatprep.subr.mxu0 %v1043_v28  ;;  %812 = vmatprep.subr.mxu1 %v1043_v28 }
  0x51   : > { %775 = vmatpush3.msra.mxu0 %v1050_v29  ;;  %813 = vmatpush3.msra.mxu1 %v1050_v29 }
  0x52   : > { %776 = vmatprep.subr.mxu0 %v1057_v30  ;;  %814 = vmatprep.subr.mxu1 %v1057_v30 }
  0x53   : > { %777 = vmatpush3.msra.mxu0 %v1064_v31  ;;  %815 = vmatpush3.msra.mxu1 %v1064_v31 }
  0x54   : > { %778 = vmatprep.subr.mxu0 %v1071_v32  ;;  %816 = vmatprep.subr.mxu1 %v1071_v32 }
  0x55   : > { %779 = vmatpush3.msra.mxu0 %v1078_v33  ;;  %817 = vmatpush3.msra.mxu1 %v1078_v33 }
  0x56   : > { %780 = vmatprep.subr.mxu0 %v1085_v34  ;;  %818 = vmatprep.subr.mxu1 %v1085_v34 }
  0x57   : > { %781 = vmatpush3.msra.mxu0 %v1092_v35  ;;  %819 = vmatpush3.msra.mxu1 %v1092_v35 }
  0x58   : > { %782 = vmatprep.subr.mxu0 %v1099_v36  ;;  %820 = vmatprep.subr.mxu1 %v1099_v36 }
  0x59   : > { %783 = vmatpush3.msra.mxu0 %v1106_v37  ;;  %821 = vmatpush3.msra.mxu1 %v1106_v37 }
  0x5a   : > { %784 = vmatprep.subr.mxu0 %v1113_v38  ;;  %822 = vmatprep.subr.mxu1 %v1113_v38 }
  0x5b   : > { %785 = vmatpush3.msra.mxu0 %v1121_v39  ;;  %823 = vmatpush3.msra.mxu1 %v1121_v39 }
  0x5c   : > { %786 = vmatprep.subr.mxu0 %v1128_v40  ;;  %824 = vmatprep.subr.mxu1 %v1128_v40 }
  0x5d   : > { %329 = vmatprep.mubr.f32.mxu0 %v259_v52  ;;  %409 = vmatprep.mubr.f32.mxu1 %v672_v53 }
  0x5e   : > { %787 = vmatpush3.msra.mxu0 %v1135_v41  ;;  %825 = vmatpush3.msra.mxu1 %v1135_v41 }
  0x5f   : > { %330 = vmatmul.mubr.f32.gmra.mxu0 %v258_v54  ;;  %410 = vmatmul.mubr.f32.gmra.mxu1 %v671_v55 }
  0x60   : > { %788 = vmatprep.subr.mxu0 %v1142_v42  ;;  %826 = vmatprep.subr.mxu1 %v1142_v42 }
  0x61   : > { %789 = vmatpush3.msra.mxu0 %v1149_v43  ;;  %827 = vmatpush3.msra.mxu1 %v1149_v43 }
  0x62   : > { %790 = vmatprep.subr.mxu0 %v1156_v44  ;;  %828 = vmatprep.subr.mxu1 %v1156_v44 }
  0x63   : > { %791 = vmatpush3.msra.mxu0 %v1163_v45  ;;  %829 = vmatpush3.msra.mxu1 %v1163_v45 }
  0x64   : > { %792 = vmatprep.subr.mxu0 %v1170_v46  ;;  %830 = vmatprep.subr.mxu1 %v1170_v46 }
  0x65   : > { %793 = vmatpush3.msra.mxu0 %v1177_v47  ;;  %486 = vmatprep.mubr.f32.mxu0 %v674_v56 }
  0x66   : > { %831 = vmatpush3.msra.mxu1 %v1177_v47  ;;  %568 = vmatprep.mubr.f32.mxu1 %v678_v57 }
  0x67   : > { %487 = vmatmul.mubr.f32.vlgmr.msra.gmra.mxu0 %v673_v58  ;;  %569 = vmatmul.mubr.f32.vlgmr.msra.gmra.mxu1 %v677_v59 }
  0x68   : > { %491 = vmatprep.mubr.f32.mxu0 %v676_v60  ;;  %573 = vmatprep.mubr.f32.mxu1 %v680_v61 }
  0x6b   : > { %492 = vmatmul.mubr.f32.gmra.mxu0 %v675_v62  ;;  %574 = vmatmul.mubr.f32.gmra.mxu1 %v679_v63 }
 0x103   : > { %v718_v0 = vpop.f32.mrf.mxu0  ;;  %v756_v1 = vpop.f32.mrf.mxu1 }
 0x105   : > { %v719_v2 = vpop.f32.mrf.mxu0  ;;  %v757_v3 = vpop.f32.mrf.mxu1 }
 0x106   : > { %v720_v8 = vadd.f32 %v719_v2, %v718_v0  ;;  %v758_v9 = vadd.f32 %v757_v3, %v756_v1 }
 0x108   : > { %v415_v14 = vmax.f32 %v720_v8, %v758_v9 }
 0x11f   : > { %v721_v4 = vpop.f32.mrf.mxu0  ;;  %v759_v5 = vpop.f32.mrf.mxu1 }
 0x121   : > { %v722_v6 = vpop.f32.mrf.mxu0  ;;  %v760_v7 = vpop.f32.mrf.mxu1 }
 0x122   : > { %v723_v15 = vadd.f32 %v722_v6, %v721_v4  ;;  %v761_v16 = vadd.f32 %v760_v7, %v759_v5 }
 0x124   : > { %v416_v25 = vmax.f32 %v723_v15, %v761_v16 }
 0x127   : > { %v794_v10 = vpop.f32.mrf.mxu0  ;;  %v832_v11 = vpop.f32.mrf.mxu1 }
 0x129   : > { %v795_v12 = vpop.f32.mrf.mxu0  ;;  %v833_v13 = vpop.f32.mrf.mxu1 }
 0x12a   : > { %v796_v17 = vadd.f32 %v795_v12, %v794_v10  ;;  %v834_v21 = vadd.f32 %v833_v13, %v832_v11 }
 0x12b   : > { %v797_v18 = vpop.f32.mrf.mxu0  ;;  %v835_v19 = vpop.f32.mrf.mxu1 }
 0x12c   : > { %v497_v20 = vmax.f32 %v415_v14, %v796_v17 }
 0x12d   : > { %v798_v23 = vpop.f32.mrf.mxu0  ;;  %v836_v24 = vpop.f32.mrf.mxu1 }
 0x12e   : > { %v579_v26 = vmax.f32 %v497_v20, %v834_v21  ;;  %v799_v27 = vadd.f32 %v798_v23, %v797_v18  ;;  %v837_v30 = vadd.f32 %v836_v24, %v835_v19 }
 0x130   : > { %v588_v28 = vadd.f32 %v681_v22, %v579_v26  ;;  %v498_v29 = vmax.f32 %v416_v25, %v799_v27 }
 0x132   : > { %v590_v31 = vmax.f32 %v588_v28, 0.0  ;;  %v580_v32 = vmax.f32 %v498_v29, %v837_v30 }
 0x134   : > { %593 = vst.msk [vmem:[%s222_s7] sm:$0xff] %vm592_vm0, %v590_v31  ;;  %v589_v33 = vadd.f32 %v681_v22, %v580_v32 }
 0x136   : > { %v591_v34 = vmax.f32 %v589_v33, 0.0 }
 0x138   : > { %594 = vst.msk [vmem:[%s222_s7 + $0x8] sm:$0xff] %vm592_vm0, %v591_v34 }
 0x139 PF: > { %p10_p9 = scmp.ge.s32.totalorder %s923_s16, 6   ;;  %s1289_s12 = smov %s880_s13 }
 0x13a   : > { %s1290_s13 = smov %s932_s19  ;;  %s1291_s14 = smov %s923_s16 }
 0x13b   :  { %12 = sbr.rel (!%p10_p9) target bundleno = 2 (0x2), region = 93 }

// kernel: cnn_forward.5
= control target key start
LH: loop header
LB: loop body
LE: loop exit
PB: predicated region body
PF: predicated region fallthrough
CT: control target
= control target key end

     0   :  { %vm614_vm0 = vmmov 0   ;;  %s1001_s1 = inlined_call_operand.vmem [shape: f32[512,128], index: 1, kind: input, shape index: {}]   ;;  %s1002_s0 = inlined_call_operand.vmem [shape: f32[8,512], index: 0, kind: input, shape index: {}]   ;;  %s1003_s3 = inlined_call_operand.vmem [shape: f32[128,128], index: 3, kind: input, shape index: {}]   ;;  %s1004_s5 = inlined_call_operand.vmem [shape: f32[128,128], index: 5, kind: input, shape index: {}]   ;;  %s1005_s2 = inlined_call_operand.vmem [shape: f32[1,128], index: 2, kind: input, shape index: {}]   ;;  %s1006_s4 = inlined_call_operand.vmem [shape: f32[1,128], index: 4, kind: input, shape index: {}]   ;;  %s1007_s6 = inlined_call_operand.vmem [shape: f32[1,128], index: 6, kind: input, shape index: {}]   ;;  %s1008_s7 = inlined_call_operand.vmem [shape: f32[8,128], index: 7, kind: output, shape index: {}]  }
   0x1   :  { %v61_v0 = vld [vmem:[%s1001_s1 + $0xf8] sm:$0xff]  ;;  %v60_v4 = vld [vmem:[%s1001_s1 + $0xf0] sm:$0xff]  ;;  %v59_v8 = vld [vmem:[%s1001_s1 + $0xe8] sm:$0xff] }
   0x2   :  { %v93_v1 = vld [vmem:[%s1001_s1 + $0x1f8] sm:$0xff]  ;;  %437 = vmatprep.subr.mxu0 %v61_v0  ;;  %v92_v5 = vld [vmem:[%s1001_s1 + $0x1f0] sm:$0xff]  ;;  %v91_v9 = vld [vmem:[%s1001_s1 + $0x1e8] sm:$0xff] }
   0x3   :  { %v45_v2 = vld [vmem:[%s1001_s1 + $0x78] sm:$0xff]  ;;  %472 = vmatprep.subr.mxu1 %v93_v1  ;;  %v44_v6 = vld [vmem:[%s1001_s1 + $0x70] sm:$0xff]  ;;  %v43_v10 = vld [vmem:[%s1001_s1 + $0x68] sm:$0xff] }
   0x4   :  { %v77_v3 = vld [vmem:[%s1001_s1 + $0x178] sm:$0xff]  ;;  %438 = vmatpush3.msra.mxu0 %v45_v2  ;;  %v76_v7 = vld [vmem:[%s1001_s1 + $0x170] sm:$0xff]  ;;  %v75_v11 = vld [vmem:[%s1001_s1 + $0x168] sm:$0xff] }
   0x5   :  { %473 = vmatpush3.msra.mxu1 %v77_v3  ;;  %439 = vmatprep.subr.mxu0 %v60_v4  ;;  %v58_v12 = vld [vmem:[%s1001_s1 + $0xe0] sm:$0xff]  ;;  %v57_v16 = vld [vmem:[%s1001_s1 + $0xd8] sm:$0xff]  ;;  %v56_v20 = vld [vmem:[%s1001_s1 + $0xd0] sm:$0xff] }
   0x6   :  { %474 = vmatprep.subr.mxu1 %v92_v5  ;;  %440 = vmatpush3.msra.mxu0 %v44_v6  ;;  %v90_v13 = vld [vmem:[%s1001_s1 + $0x1e0] sm:$0xff]  ;;  %v89_v17 = vld [vmem:[%s1001_s1 + $0x1d8] sm:$0xff]  ;;  %v88_v21 = vld [vmem:[%s1001_s1 + $0x1d0] sm:$0xff]  ;;  %v613_v5 = vmov 0.0  }
   0x7   :  { %475 = vmatpush3.msra.mxu1 %v76_v7  ;;  %441 = vmatprep.subr.mxu0 %v59_v8  ;;  %v42_v14 = vld [vmem:[%s1001_s1 + $0x60] sm:$0xff]  ;;  %v41_v18 = vld [vmem:[%s1001_s1 + $0x58] sm:$0xff]  ;;  %v40_v22 = vld [vmem:[%s1001_s1 + $0x50] sm:$0xff] }
   0x8   :  { %476 = vmatprep.subr.mxu1 %v91_v9  ;;  %v74_v15 = vld [vmem:[%s1001_s1 + $0x160] sm:$0xff]  ;;  %442 = vmatpush3.msra.mxu0 %v43_v10  ;;  %v73_v19 = vld [vmem:[%s1001_s1 + $0x158] sm:$0xff]  ;;  %v72_v23 = vld [vmem:[%s1001_s1 + $0x150] sm:$0xff] }
   0x9   :  { %477 = vmatpush3.msra.mxu1 %v75_v11  ;;  %443 = vmatprep.subr.mxu0 %v58_v12  ;;  %v55_v24 = vld [vmem:[%s1001_s1 + $0xc8] sm:$0xff]  ;;  %v54_v28 = vld [vmem:[%s1001_s1 + $0xc0] sm:$0xff]  ;;  %v53_v32 = vld [vmem:[%s1001_s1 + $0xb8] sm:$0xff] }
   0xa   :  { %478 = vmatprep.subr.mxu1 %v90_v13  ;;  %444 = vmatpush3.msra.mxu0 %v42_v14  ;;  %v87_v25 = vld [vmem:[%s1001_s1 + $0x1c8] sm:$0xff]  ;;  %v86_v29 = vld [vmem:[%s1001_s1 + $0x1c0] sm:$0xff]  ;;  %v85_v33 = vld [vmem:[%s1001_s1 + $0x1b8] sm:$0xff] }
   0xb   :  { %479 = vmatpush3.msra.mxu1 %v74_v15  ;;  %445 = vmatprep.subr.mxu0 %v57_v16  ;;  %v39_v26 = vld [vmem:[%s1001_s1 + $0x48] sm:$0xff]  ;;  %v38_v30 = vld [vmem:[%s1001_s1 + $0x40] sm:$0xff]  ;;  %v37_v34 = vld [vmem:[%s1001_s1 + $0x38] sm:$0xff] }
   0xc   :  { %480 = vmatprep.subr.mxu1 %v89_v17  ;;  %446 = vmatpush3.msra.mxu0 %v41_v18  ;;  %v71_v27 = vld [vmem:[%s1001_s1 + $0x148] sm:$0xff]  ;;  %v70_v31 = vld [vmem:[%s1001_s1 + $0x140] sm:$0xff]  ;;  %v69_v35 = vld [vmem:[%s1001_s1 + $0x138] sm:$0xff] }
   0xd   :  { %481 = vmatpush3.msra.mxu1 %v73_v19  ;;  %447 = vmatprep.subr.mxu0 %v56_v20  ;;  %v52_v36 = vld [vmem:[%s1001_s1 + $0xb0] sm:$0xff]  ;;  %v51_v40 = vld [vmem:[%s1001_s1 + $0xa8] sm:$0xff]  ;;  %v50_v44 = vld [vmem:[%s1001_s1 + $0xa0] sm:$0xff] }
   0xe   :  { %482 = vmatprep.subr.mxu1 %v88_v21  ;;  %448 = vmatpush3.msra.mxu0 %v40_v22  ;;  %v84_v37 = vld [vmem:[%s1001_s1 + $0x1b0] sm:$0xff]  ;;  %v83_v41 = vld [vmem:[%s1001_s1 + $0x1a8] sm:$0xff]  ;;  %v82_v45 = vld [vmem:[%s1001_s1 + $0x1a0] sm:$0xff] }
   0xf   :  { %483 = vmatpush3.msra.mxu1 %v72_v23  ;;  %449 = vmatprep.subr.mxu0 %v55_v24  ;;  %v36_v38 = vld [vmem:[%s1001_s1 + $0x30] sm:$0xff]  ;;  %v35_v42 = vld [vmem:[%s1001_s1 + $0x28] sm:$0xff]  ;;  %v34_v46 = vld [vmem:[%s1001_s1 + $0x20] sm:$0xff] }
  0x10   :  { %484 = vmatprep.subr.mxu1 %v87_v25  ;;  %450 = vmatpush3.msra.mxu0 %v39_v26  ;;  %v68_v39 = vld [vmem:[%s1001_s1 + $0x130] sm:$0xff]  ;;  %v67_v43 = vld [vmem:[%s1001_s1 + $0x128] sm:$0xff]  ;;  %v66_v47 = vld [vmem:[%s1001_s1 + $0x120] sm:$0xff] }
  0x11   :  { %485 = vmatpush3.msra.mxu1 %v71_v27  ;;  %451 = vmatprep.subr.mxu0 %v54_v28  ;;  %v49_v48 = vld [vmem:[%s1001_s1 + $0x98] sm:$0xff]  ;;  %v48_v52 = vld [vmem:[%s1001_s1 + $0x90] sm:$0xff]  ;;  %v47_v56 = vld [vmem:[%s1001_s1 + $0x88] sm:$0xff] }
  0x12   :  { %486 = vmatprep.subr.mxu1 %v86_v29  ;;  %452 = vmatpush3.msra.mxu0 %v38_v30  ;;  %v81_v49 = vld [vmem:[%s1001_s1 + $0x198] sm:$0xff]  ;;  %v80_v53 = vld [vmem:[%s1001_s1 + $0x190] sm:$0xff]  ;;  %v79_v57 = vld [vmem:[%s1001_s1 + $0x188] sm:$0xff] }
  0x13   :  { %487 = vmatpush3.msra.mxu1 %v70_v31  ;;  %453 = vmatprep.subr.mxu0 %v53_v32  ;;  %v33_v50 = vld [vmem:[%s1001_s1 + $0x18] sm:$0xff]  ;;  %v32_v54 = vld [vmem:[%s1001_s1 + $0x10] sm:$0xff]  ;;  %v31_v58 = vld [vmem:[%s1001_s1 + $0x8] sm:$0xff] }
  0x14   :  { %488 = vmatprep.subr.mxu1 %v85_v33  ;;  %454 = vmatpush3.msra.mxu0 %v37_v34  ;;  %v65_v51 = vld [vmem:[%s1001_s1 + $0x118] sm:$0xff]  ;;  %v64_v55 = vld [vmem:[%s1001_s1 + $0x110] sm:$0xff]  ;;  %v63_v59 = vld [vmem:[%s1001_s1 + $0x108] sm:$0xff] }
  0x15   :  { %489 = vmatpush3.msra.mxu1 %v69_v35  ;;  %455 = vmatprep.subr.mxu0 %v52_v36  ;;  %v46_v60 = vld [vmem:[%s1001_s1 + $0x80] sm:$0xff]  ;;  %v27_v63 = vld [vmem:[%s1002_s0 + $0x8] sm:$0xff]  ;;  %v29_v1 = vld [vmem:[%s1002_s0 + $0x18] sm:$0xff] }
  0x16   :  { %490 = vmatprep.subr.mxu1 %v84_v37  ;;  %456 = vmatpush3.msra.mxu0 %v36_v38  ;;  %v78_v61 = vld [vmem:[%s1001_s1 + $0x180] sm:$0xff]  ;;  %v28_v3 = vld [vmem:[%s1002_s0 + $0x10] sm:$0xff]  ;;  %v257_v4 = vld [vmem:[%s1003_s3 + $0x78] sm:$0xff] }
  0x17   :  { %491 = vmatpush3.msra.mxu1 %v68_v39  ;;  %457 = vmatprep.subr.mxu0 %v51_v40  ;;  %v30_v62 = vld [vmem:[%s1001_s1] sm:$0xff]  ;;  %v256_v6 = vld [vmem:[%s1003_s3 + $0x70] sm:$0xff]  ;;  %v255_v7 = vld [vmem:[%s1003_s3 + $0x68] sm:$0xff] }
  0x18   :  { %492 = vmatprep.subr.mxu1 %v83_v41  ;;  %458 = vmatpush3.msra.mxu0 %v35_v42  ;;  %v62_v0 = vld [vmem:[%s1001_s1 + $0x100] sm:$0xff]  ;;  %v253_v9 = vld [vmem:[%s1003_s3 + $0x58] sm:$0xff]  ;;  %v252_v10 = vld [vmem:[%s1003_s3 + $0x50] sm:$0xff] }
  0x19   :  { %493 = vmatpush3.msra.mxu1 %v67_v43  ;;  %459 = vmatprep.subr.mxu0 %v50_v44  ;;  %v26_v2 = vld [vmem:[%s1002_s0] sm:$0xff]  ;;  %v251_v11 = vld [vmem:[%s1003_s3 + $0x48] sm:$0xff]  ;;  %v249_v13 = vld [vmem:[%s1003_s3 + $0x38] sm:$0xff] }
  0x1a   :  { %494 = vmatprep.subr.mxu1 %v82_v45  ;;  %460 = vmatpush3.msra.mxu0 %v34_v46  ;;  %v254_v8 = vld [vmem:[%s1003_s3 + $0x60] sm:$0xff]  ;;  %v248_v14 = vld [vmem:[%s1003_s3 + $0x30] sm:$0xff]  ;;  %v247_v15 = vld [vmem:[%s1003_s3 + $0x28] sm:$0xff] }
  0x1b   :  { %495 = vmatpush3.msra.mxu1 %v66_v47  ;;  %461 = vmatprep.subr.mxu0 %v49_v48  ;;  %v250_v12 = vld [vmem:[%s1003_s3 + $0x40] sm:$0xff]  ;;  %v245_v17 = vld [vmem:[%s1003_s3 + $0x18] sm:$0xff]  ;;  %v244_v18 = vld [vmem:[%s1003_s3 + $0x10] sm:$0xff] }
  0x1c   :  { %496 = vmatprep.subr.mxu1 %v81_v49  ;;  %462 = vmatpush3.msra.mxu0 %v33_v50  ;;  %v246_v16 = vld [vmem:[%s1003_s3 + $0x20] sm:$0xff]  ;;  %v243_v19 = vld [vmem:[%s1003_s3 + $0x8] sm:$0xff]  ;;  %v351_v21 = vld [vmem:[%s1004_s5 + $0x78] sm:$0xff] }
  0x1d   :  { %497 = vmatpush3.msra.mxu1 %v65_v51  ;;  %463 = vmatprep.subr.mxu0 %v48_v52  ;;  %v242_v20 = vld [vmem:[%s1003_s3] sm:$0xff]  ;;  %v350_v22 = vld [vmem:[%s1004_s5 + $0x70] sm:$0xff]  ;;  %v349_v23 = vld [vmem:[%s1004_s5 + $0x68] sm:$0xff] }
  0x1e   :  { %498 = vmatprep.subr.mxu1 %v80_v53  ;;  %464 = vmatpush3.msra.mxu0 %v32_v54  ;;  %v348_v24 = vld [vmem:[%s1004_s5 + $0x60] sm:$0xff]  ;;  %v347_v25 = vld [vmem:[%s1004_s5 + $0x58] sm:$0xff]  ;;  %v346_v26 = vld [vmem:[%s1004_s5 + $0x50] sm:$0xff] }
  0x1f   :  { %499 = vmatpush3.msra.mxu1 %v64_v55  ;;  %465 = vmatprep.subr.mxu0 %v47_v56  ;;  %v345_v27 = vld [vmem:[%s1004_s5 + $0x48] sm:$0xff]  ;;  %v344_v28 = vld [vmem:[%s1004_s5 + $0x40] sm:$0xff]  ;;  %v343_v29 = vld [vmem:[%s1004_s5 + $0x38] sm:$0xff] }
  0x20   :  { %500 = vmatprep.subr.mxu1 %v79_v57  ;;  %466 = vmatpush3.msra.mxu0 %v31_v58  ;;  %v342_v30 = vld [vmem:[%s1004_s5 + $0x30] sm:$0xff]  ;;  %v341_v31 = vld [vmem:[%s1004_s5 + $0x28] sm:$0xff]  ;;  %v340_v32 = vld [vmem:[%s1004_s5 + $0x20] sm:$0xff] }
  0x21   :  { %501 = vmatpush3.msra.mxu1 %v63_v59  ;;  %467 = vmatprep.subr.mxu0 %v46_v60  ;;  %v339_v33 = vld [vmem:[%s1004_s5 + $0x18] sm:$0xff]  ;;  %v434_v36 = vld [vmem:[%s1005_s2] ss:$0 sm:$0xff]  ;;  %v338_v44 = vld [vmem:[%s1004_s5 + $0x10] sm:$0xff] }
  0x22   :  { %502 = vmatprep.subr.mxu1 %v78_v61  ;;  %468 = vmatpush3.msra.mxu0 %v30_v62  ;;  %v337_v45 = vld [vmem:[%s1004_s5 + $0x8] sm:$0xff]  ;;  %v336_v46 = vld [vmem:[%s1004_s5] sm:$0xff] }
  0x23   :  { %165 = vmatprep.mubr.f32.mxu0 %v27_v63  ;;  %503 = vmatpush3.msra.mxu1 %v62_v0  ;;  %v435_v47 = vld [vmem:[%s1006_s4] ss:$0 sm:$0xff] }
  0x24   :  { %235 = vmatprep.mubr.f32.mxu1 %v29_v1  ;;  %166 = vmatmul.mubr.f32.vlgmr.msra.gmra.mxu0 %v26_v2  ;;  %v436_v52 = vld [vmem:[%s1007_s6] ss:$0 sm:$0xff] }
  0x25   :  { %236 = vmatmul.mubr.f32.vlgmr.msra.gmra.mxu1 %v28_v3  ;;  %541 = vmatprep.subr.mxu0 %v613_v5 }
  0x26   :  { %576 = vmatprep.subr.mxu1 %v613_v5  ;;  %542 = vmatpush3.msra.mxu0 %v257_v4 }
  0x27   :  { %543 = vmatprep.subr.mxu0 %v613_v5  ;;  %573 = vmatprep.mubr.msk.f32.mxu0 %vm614_vm0, %v613_v5 }
  0x28   :  { %544 = vmatpush3.msra.mxu0 %v256_v6  ;;  %608 = vmatprep.mubr.msk.f32.mxu1 %vm614_vm0, %v613_v5 }
  0x29   :  { %545 = vmatprep.subr.mxu0 %v613_v5  ;;  %577 = vmatpush3.msra.mxu1 %v351_v21 }
  0x2a   :  { %546 = vmatpush3.msra.mxu0 %v255_v7  ;;  %578 = vmatprep.subr.mxu1 %v613_v5 }
  0x2b   :  { %547 = vmatprep.subr.mxu0 %v613_v5  ;;  %579 = vmatpush3.msra.mxu1 %v350_v22 }
  0x2c   :  { %548 = vmatpush3.msra.mxu0 %v254_v8  ;;  %580 = vmatprep.subr.mxu1 %v613_v5 }
  0x2d   :  { %549 = vmatprep.subr.mxu0 %v613_v5  ;;  %581 = vmatpush3.msra.mxu1 %v349_v23 }
  0x2e   :  { %550 = vmatpush3.msra.mxu0 %v253_v9  ;;  %582 = vmatprep.subr.mxu1 %v613_v5 }
  0x2f   :  { %551 = vmatprep.subr.mxu0 %v613_v5  ;;  %583 = vmatpush3.msra.mxu1 %v348_v24 }
  0x30   :  { %552 = vmatpush3.msra.mxu0 %v252_v10  ;;  %584 = vmatprep.subr.mxu1 %v613_v5 }
  0x31   :  { %553 = vmatprep.subr.mxu0 %v613_v5  ;;  %585 = vmatpush3.msra.mxu1 %v347_v25 }
  0x32   :  { %554 = vmatpush3.msra.mxu0 %v251_v11  ;;  %586 = vmatprep.subr.mxu1 %v613_v5 }
  0x33   :  { %555 = vmatprep.subr.mxu0 %v613_v5  ;;  %587 = vmatpush3.msra.mxu1 %v346_v26 }
  0x34   :  { %556 = vmatpush3.msra.mxu0 %v250_v12  ;;  %588 = vmatprep.subr.mxu1 %v613_v5 }
  0x35   :  { %557 = vmatprep.subr.mxu0 %v613_v5  ;;  %589 = vmatpush3.msra.mxu1 %v345_v27 }
  0x36   :  { %558 = vmatpush3.msra.mxu0 %v249_v13  ;;  %590 = vmatprep.subr.mxu1 %v613_v5 }
  0x37   :  { %559 = vmatprep.subr.mxu0 %v613_v5  ;;  %591 = vmatpush3.msra.mxu1 %v344_v28 }
  0x38   :  { %560 = vmatpush3.msra.mxu0 %v248_v14  ;;  %592 = vmatprep.subr.mxu1 %v613_v5 }
  0x39   :  { %561 = vmatprep.subr.mxu0 %v613_v5  ;;  %593 = vmatpush3.msra.mxu1 %v343_v29 }
  0x3a   :  { %562 = vmatpush3.msra.mxu0 %v247_v15  ;;  %594 = vmatprep.subr.mxu1 %v613_v5 }
  0x3b   :  { %563 = vmatprep.subr.mxu0 %v613_v5  ;;  %595 = vmatpush3.msra.mxu1 %v342_v30 }
  0x3c   :  { %564 = vmatpush3.msra.mxu0 %v246_v16  ;;  %596 = vmatprep.subr.mxu1 %v613_v5 }
  0x3d   :  { %565 = vmatprep.subr.mxu0 %v613_v5  ;;  %597 = vmatpush3.msra.mxu1 %v341_v31 }
  0x3e   :  { %566 = vmatpush3.msra.mxu0 %v245_v17  ;;  %598 = vmatprep.subr.mxu1 %v613_v5 }
  0x3f   :  { %567 = vmatprep.subr.mxu0 %v613_v5  ;;  %599 = vmatpush3.msra.mxu1 %v340_v32 }
  0x40   :  { %568 = vmatpush3.msra.mxu0 %v244_v18  ;;  %600 = vmatprep.subr.mxu1 %v613_v5 }
  0x41   :  { %569 = vmatprep.subr.mxu0 %v613_v5  ;;  %601 = vmatpush3.msra.mxu1 %v339_v33 }
  0x42   :  { %570 = vmatpush3.msra.mxu0 %v243_v19  ;;  %602 = vmatprep.subr.mxu1 %v613_v5 }
  0x43   :  { %571 = vmatprep.subr.mxu0 %v613_v5  ;;  %603 = vmatpush3.msra.mxu1 %v338_v44 }
  0x44   :  { %572 = vmatpush3.msra.mxu0 %v242_v20  ;;  %604 = vmatprep.subr.mxu1 %v613_v5 }
  0x45   :  { %605 = vmatpush3.msra.mxu1 %v337_v45 }
  0x46   :  { %606 = vmatprep.subr.mxu1 %v613_v5 }
  0x47   :  { %607 = vmatpush3.msra.mxu1 %v336_v46 }
  0xe4   :  { %v469_v34 = vpop.f32.mrf.mxu0 }
  0xe5   :  { %v504_v35 = vpop.f32.mrf.mxu1 }
  0xe6   :  { %v470_v37 = vpop.f32.mrf.mxu0 }
  0xe7   :  { %v505_v38 = vpop.f32.mrf.mxu1  ;;  %v471_v39 = vadd.f32 %v470_v37, %v469_v34 }
  0xe8   :  { %v506_v41 = vadd.f32 %v505_v38, %v504_v35 }
  0xe9   :  { %v168_v40 = vadd.f32 %v471_v39, %v434_v36 }
  0xeb   :  { %v238_v42 = vadd.f32 %v506_v41, %v168_v40 }
  0xed   :  { %v241_v43 = vmax.f32 %v238_v42, 0.0 }
  0xef   :  { %574 = vmatmul.mubr.f32.vlgmr.msra.gmra.mxu0 %v241_v43 }
 0x1af   :  { %v331_v48 = vpop.f32.mrf.mxu0 }
 0x1b0   :  { %v332_v49 = vadd.f32 %v435_v47, %v331_v48 }
 0x1b1   :  { %v575_v50 = vpop.f32.mrf.mxu0 }
 0x1b2   :  { %v335_v51 = vmax.f32 %v332_v49, 0.0 }
 0x1b4   :  { %609 = vmatmul.mubr.f32.vlgmr.msra.gmra.mxu1 %v335_v51 }
 0x274   :  { %v425_v53 = vpop.f32.mrf.mxu1 }
 0x275   :  { %v426_v54 = vadd.f32 %v436_v52, %v425_v53 }
 0x276   :  { %v610_v55 = vpop.f32.mrf.mxu1 }
 0x277   :  { %429 = vst [vmem:[%s1008_s7] sm:$0xff] %v426_v54 }

</bundles_post_ra>
